<compile_context>
chip_gen: v6e
topology: v6e:2x2x1
jax: 0.10.0
libtpu: 0.0.40
codegen_flags: <defaults>
</compile_context>

<pallas_src>
import numpy as np
import jax
import jax.numpy as jnp
from jax.experimental import pallas as pl
from jax.experimental.pallas import tpu as pltpu

VMEM_SPEC = pl.BlockSpec(memory_space=pltpu.MemorySpace.VMEM)

# Matmul operand dtype (f32 accumulation always). Set to jnp.bfloat16 on
# v5e/v6e/v7x for MXU-native operands when FLOP-bound (loosen tolerance ~2e-2).
MATMUL_DTYPE = jnp.float32


def _mm(a, w):
    """MXU matmul with f32 accumulation; operands cast to the weight dtype."""
    return jnp.dot(a.astype(w.dtype), w, preferred_element_type=jnp.float32)


# ----------------------------------------------------------------------------
# Fused kernel factory
# ----------------------------------------------------------------------------
def _make_kernel(n_layers, S, Bt, H2, with_task):
    H = 2 * H2

    def kernel(*refs):
        ins, out_ref = refs[:-1], refs[-1]
        if with_task:
            (te_ref, wih_ref, whh_ref, bsum_ref,
             wm1_ref, bm1_ref, wm2_ref, bm2_ref, obs_ref) = ins[:9]
            base = 9
        else:
            obs_ref = ins[0]
            base = 1
        fe_refs = ins[base:base + 4 * n_layers]
        (wh1_ref, bh1_ref, wh2_ref, wdir_ref,
         bslab_ref, mslab_ref) = ins[base + 4 * n_layers:]

        gains = biases = None
        if with_task:
            # --- merged bidirectional LSTM -------------------------------
            # Input projection + biases hoisted: one wide matmul for all steps
            # of both directions.  Gate columns: [i_f,i_b,f_f,f_b,o_f,o_b,g_f,g_b]
            gx = _mm(te_ref[...], wih_ref[...]) + bsum_ref[...]   # (S*Bt, 8*H2)
            whh = whh_ref[...]                                    # (2*H2, 8*H2)
            h = jnp.zeros((Bt, H), jnp.float32)                   # [h_fwd | h_bwd]
            c = jnp.zeros((Bt, H), jnp.float32)
            # TODO(synk): for long trajectories switch this unrolled loop to
            # lax.fori_loop to bound code size / vreg live ranges.
            for t in range(S):
                gates = gx[t * Bt:(t + 1) * Bt, :] + _mm(h, whh)
                sg = jax.nn.sigmoid(gates[:, :6 * H2])            # i,f,o (both dirs)
                gg = jnp.tanh(gates[:, 6 * H2:])                  # g (both dirs)
                c = sg[:, 2 * H2:4 * H2] * c + sg[:, :2 * H2] * gg
                h = sg[:, 4 * H2:6 * H2] * jnp.tanh(c)
            # h == hidden.transpose(0,1).reshape(Bt, -1) of the torch LSTM.
            hid = jnp.maximum(_mm(h, wm1_ref[...]) + bm1_ref[...], 0.0)
            mod = _mm(hid, wm2_ref[...]) + bm2_ref[...]           # (Bt, 2*H)
            gains = 1.0 + 0.1 * jnp.tanh(mod[:, :H])
            biases = mod[:, H:]

        # --- feature extractor: Linear -> ReLU -> [FiLM] -> LayerNorm ----
        x = obs_ref[...]
        for l in range(n_layers):
            w, b, g, be = fe_refs[4 * l:4 * l + 4]
            x = jnp.maximum(_mm(x, w[...]) + b[...], 0.0)
            if with_task:
                x = x * gains + biases
            mu = jnp.mean(x, axis=-1, keepdims=True)
            xc = x - mu
            var = jnp.mean(jnp.square(xc), axis=-1, keepdims=True)
            x = xc * jax.lax.rsqrt(var + 1e-5) * g[...] + be[...]

        # --- heads fused into 3 lane-dense matmuls -> one (B, PAD) slab ---
        h1 = jnp.maximum(_mm(x, wh1_ref[...]) + bh1_ref[...], 0.0)   # [p_hid | v_hid]
        out_ref[...] = (_mm(h1, wh2_ref[...]) + _mm(x, wdir_ref[...])
                        + bslab_ref[...] + mslab_ref[...])

    return kernel


# ----------------------------------------------------------------------------
# Weight preparation (layout plumbing, done outside the kernel; cacheable)
# ----------------------------------------------------------------------------
def _merge_lstm_params(lstm_fwd, lstm_bwd, D, H2):
    """Pack both LSTM directions into merged, lane-dense matrices.

    Gate-column layout (blocks of width H2): [i_f,i_b, f_f,f_b, o_f,o_b, g_f,g_b].
    The input-projection matrix acts on rows [x_t | x_{S-1-t}] (fwd | reversed).
    """
    G = 8 * H2
    wih = jnp.zeros((2 * D, G), jnp.float32)
    whh = jnp.zeros((2 * H2, G), jnp.float32)
    bias = jnp.zeros((G,), jnp.float32)
    # PyTorch gate row order is [i, f, g, o]; fwd destination block per gate.
    src_to_dst = {0: 0, 1: 2, 2: 6, 3: 4}
    for d, (p, r_ih, r_hh) in enumerate(((lstm_fwd, 0, 0), (lstm_bwd, D, H2))):
        b_sum = p['b_ih'] + p['b_hh']
        for src, dst in src_to_dst.items():
            c0 = (dst + d) * H2
            wih = wih.at[r_ih:r_ih + D, c0:c0 + H2].set(
                p['w_ih'][src * H2:(src + 1) * H2, :].T)
            whh = whh.at[r_hh:r_hh + H2, c0:c0 + H2].set(
                p['w_hh'][src * H2:(src + 1) * H2, :].T)
            bias = bias.at[c0:c0 + H2].set(b_sum[src * H2:(src + 1) * H2])
    return (wih.astype(MATMUL_DTYPE), whh.astype(MATMUL_DTYPE),
            bias.reshape(1, -1))


def _prep_heads(params, A, H, H2, NSYM, NCON, PAD):
    t = jnp.transpose
    wh1 = jnp.concatenate([t(params['p1'][0]), t(params['v1'][0])], axis=1)  # (H, 2H2)
    bh1 = jnp.concatenate([params['p1'][1], params['v1'][1]]).reshape(1, -1)
    wh2 = jnp.zeros((2 * H2, PAD), jnp.float32)
    wh2 = wh2.at[:H2, :A].set(t(params['p2'][0]))
    wh2 = wh2.at[H2:, A:A + 1].set(t(params['v2'][0]))
    wdir = jnp.zeros((H, PAD), jnp.float32)
    wdir = wdir.at[:, A + 1:A + 1 + NSYM].set(t(params['sym'][0]))
    wdir = wdir.at[:, A + 1 + NSYM:A + 1 + NSYM + NCON].set(t(params['cons'][0]))
    wdir = wdir.at[:, A + 1 + NSYM + NCON:A + 1 + NSYM + NCON + H].set(
        jnp.eye(H, dtype=jnp.float32))
    bslab = jnp.zeros((1, PAD), jnp.float32)
    bslab = bslab.at[0, :A].set(params['p2'][1])
    bslab = bslab.at[0, A:A + 1].set(params['v2'][1])
    bslab = bslab.at[0, A + 1:A + 1 + NSYM].set(params['sym'][1])
    bslab = bslab.at[0, A + 1 + NSYM:A + 1 + NSYM + NCON].set(params['cons'][1])
    return [wh1.astype(MATMUL_DTYPE), bh1, wh2.astype(MATMUL_DTYPE),
            wdir.astype(MATMUL_DTYPE), bslab]


# ----------------------------------------------------------------------------
# Parameter initialization (mirrors module __init__)
# ----------------------------------------------------------------------------
def init_params(key, obs_dim, action_dim, hidden_dim, n_layers=3):
    H2 = hidden_dim // 2
    ortho = jax.nn.initializers.orthogonal(scale=float(np.sqrt(2.0)))
    keys = iter(jax.random.split(key, 32))

    def linear(out_d, in_d):
        return (ortho(next(keys), (out_d, in_d), jnp.float32),
                jnp.zeros((out_d,), jnp.float32))

    bound = 1.0 / np.sqrt(H2)

    def lstm_dir():
        return dict(
            w_ih=jax.random.uniform(next(keys), (4 * H2, obs_dim), jnp.float32, -bound, bound),
            w_hh=jax.random.uniform(next(keys), (4 * H2, H2), jnp.float32, -bound, bound),
            b_ih=jax.random.uniform(next(keys), (4 * H2,), jnp.float32, -bound, bound),
            b_hh=jax.random.uniform(next(keys), (4 * H2,), jnp.float32, -bound, bound))

    params = {
        'lstm_fwd': lstm_dir(),
        'lstm_bwd': lstm_dir(),
        'mod1': linear(hidden_dim, hidden_dim),
        'mod2': linear(2 * hidden_dim, hidden_dim),
        'p1': linear(H2, hidden_dim), 'p2': linear(action_dim, H2),
        'v1': linear(H2, hidden_dim), 'v2': linear(1, H2),
        'sym': linear(10, hidden_dim), 'cons': linear(5, hidden_dim),
        'fe': [],
    }
    in_d = obs_dim
    for _ in range(n_layers):
        w, b = linear(hidden_dim, in_d)
        params['fe'].append((w, b,
                             jnp.ones((hidden_dim,), jnp.float32),    # LN gamma
                             jnp.zeros((hidden_dim,), jnp.float32)))  # LN beta
        in_d = hidden_dim
    return params


# ----------------------------------------------------------------------------
# Forward wrapper
# ----------------------------------------------------------------------------
def meta_learning_policy_forward(params, obs, task_embedding=None, action_mask=None):
    obs = jnp.asarray(obs, jnp.float32)
    B, D = obs.shape
    H = params['mod1'][0].shape[0]
    H2 = H // 2
    A = params['p2'][0].shape[0]
    NSYM = params['sym'][0].shape[0]
    NCON = params['cons'][0].shape[0]
    n_layers = len(params['fe'])
    slab_w = A + 1 + NSYM + NCON + H
    PAD = max(128, ((slab_w + 127) // 128) * 128)     # lane-dense output width

    # --- weight prep (pre-transposed / fused layouts) ---
    fe_flat = []
    for (w, b, g, be) in params['fe']:
        fe_flat += [jnp.transpose(w).astype(MATMUL_DTYPE), b.reshape(1, -1),
                    g.reshape(1, -1), be.reshape(1, -1)]
    head_args = _prep_heads(params, A, H, H2, NSYM, NCON, PAD)

    # --- action mask -> additive 0 / -inf bias slab (lane-dense) ---
    mslab = jnp.zeros((B, PAD), jnp.float32)
    if action_mask is not None:
        mask = jnp.asarray(action_mask).astype(bool)
        if mask.shape[-1] < A:
            pad = [(0, 0)] * (mask.ndim - 1) + [(0, A - mask.shape[-1])]
            mask = jnp.pad(mask, pad, constant_values=False)
        elif mask.shape[-1] > A:
            mask = mask[..., :A]
        if mask.ndim == 1:
            mask = mask[None, :]
        mask = jnp.broadcast_to(mask, (B, A))
        mslab = mslab.at[:, :A].set(jnp.where(mask, 0.0, -jnp.inf))
    head_args = head_args + [mslab]

    if task_embedding is not None:
        te = jnp.asarray(task_embedding, jnp.float32)
        if te.ndim == 2:
            te = te[None]                                 # torch unsqueeze(0)
        Bt, S = te.shape[0], te.shape[1]
        te_t = jnp.transpose(te, (1, 0, 2))               # (S, Bt, D) time-major
        # Row t carries [x_t | x_{S-1-t}] so one matmul projects both directions.
        te_cat = jnp.concatenate([te_t, te_t[::-1]], axis=-1).reshape(S * Bt, 2 * D)
        wih, whh, bsum = _merge_lstm_params(params['lstm_fwd'], params['lstm_bwd'], D, H2)
        args = [te_cat, wih, whh, bsum,
                jnp.transpose(params['mod1'][0]).astype(MATMUL_DTYPE),
                params['mod1'][1].reshape(1, -1),
                jnp.transpose(params['mod2'][0]).astype(MATMUL_DTYPE),
                params['mod2'][1].reshape(1, -1),
                obs] + fe_flat + head_args
        kernel = _make_kernel(n_layers, S, Bt, H2, with_task=True)
    else:
        args = [obs] + fe_flat + head_args
        kernel = _make_kernel(n_layers, 0, 0, H2, with_task=False)

    # Single fused, gridless pallas_call (all operands tiny -> whole-array VMEM).
    # TODO(synk): for large batch add a grid over B (obs/mask/out tiled, weights
    # pinned via index_map->(0, ...)) with dimension_semantics=("parallel",) so
    # both v7x TensorCores are used and tiles stay within the 32 MiB VMEM limit.
    slab = pl.pallas_call(
        kernel,
        out_shape=jax.ShapeDtypeStruct((B, PAD), jnp.float32),
        in_specs=[VMEM_SPEC] * len(args),
        out_specs=VMEM_SPEC,
    )(*args)

    c0 = A + 1
    return {
        'policy_logits': slab[:, :A],
        'value': slab[:, A:A + 1],
        'symmetries_logits': slab[:, c0:c0 + NSYM],
        'conservations_logits': slab[:, c0 + NSYM:c0 + NSYM + NCON],
        'features': slab[:, c0 + NSYM + NCON:c0 + NSYM + NCON + H],
    }
    # TODO(synk): act() (Categorical sampling / log_prob / entropy / NaN fallback)
    # is host-side policy control, intentionally not kernelized.


# ----------------------------------------------------------------------------
# Pure-JAX reference (mirror of the PyTorch forward) for verification
# ----------------------------------------------------------------------------
def _reference_forward(params, obs, task_embedding, action_mask):
    H = params['mod1'][0].shape[0]
    H2 = H // 2

    def lstm_dir(p, xs, reverse):
        h = jnp.zeros((xs.shape[0], H2), jnp.float32)
        c = jnp.zeros_like(h)
        steps = range(xs.shape[1] - 1, -1, -1) if reverse else range(xs.shape[1])
        for tt in steps:
            g = xs[:, tt] @ p['w_ih'].T + p['b_ih'] + h @ p['w_hh'].T + p['b_hh']
            i_g = jax.nn.sigmoid(g[:, :H2]); f_g = jax.nn.sigmoid(g[:, H2:2 * H2])
            g_g = jnp.tanh(g[:, 2 * H2:3 * H2]); o_g = jax.nn.sigmoid(g[:, 3 * H2:])
            c = f_g * c + i_g * g_g
            h = o_g * jnp.tanh(c)
        return h

    te = task_embedding if task_embedding.ndim == 3 else task_embedding[None]
    tf = jnp.concatenate([lstm_dir(params['lstm_fwd'], te, False),
                          lstm_dir(params['lstm_bwd'], te, True)], -1)
    hid = jax.nn.relu(tf @ params['mod1'][0].T + params['mod1'][1])
    mod = hid @ params['mod2'][0].T + params['mod2'][1]
    gains = 1.0 + 0.1 * jnp.tanh(mod[:, :H]); biases = mod[:, H:]

    x = obs
    for (w, b, g, be) in params['fe']:
        x = jax.nn.relu(x @ w.T + b)
        x = x * gains + biases
        mu = x.mean(-1, keepdims=True)
        var = ((x - mu) ** 2).mean(-1, keepdims=True)
        x = (x - mu) / jnp.sqrt(var + 1e-5) * g + be
    feats = x
    logits = jax.nn.relu(x @ params['p1'][0].T + params['p1'][1]) @ params['p2'][0].T + params['p2'][1]
    logits = jnp.where(jnp.broadcast_to(jnp.asarray(action_mask, bool), logits.shape),
                       logits, -jnp.inf)
    value = jax.nn.relu(x @ params['v1'][0].T + params['v1'][1]) @ params['v2'][0].T + params['v2'][1]
    sym = x @ params['sym'][0].T + params['sym'][1]
    cons = x @ params['cons'][0].T + params['cons'][1]
    return {'policy_logits': logits, 'value': value, 'symmetries_logits': sym,
            'conservations_logits': cons, 'features': feats}


if __name__ == "__main__":
    B, S = 2, 8
    obs_dim, action_dim, hidden_dim = 16, 6, 32

    key = jax.random.PRNGKey(0)
    kp, ko, kt = jax.random.split(key, 3)
    params = init_params(kp, obs_dim, action_dim, hidden_dim, n_layers=3)

    obs = jax.random.normal(ko, (B, obs_dim), jnp.float32)
    task_emb = jax.random.normal(kt, (B, S, obs_dim), jnp.float32)
    action_mask = jnp.array([[True] * action_dim,
                             [True, True, True, True, False, False]])

    fwd = jax.jit(meta_learning_policy_forward)
    out = fwd(params, obs, task_emb, action_mask)
    jax.block_until_ready(out)

    ref = _reference_forward(params, obs, task_emb, action_mask)
    tol = 2e-3 if MATMUL_DTYPE == jnp.float32 else 2e-2
    for k in out:
        np.testing.assert_allclose(np.asarray(out[k]), np.asarray(ref[k]),
                                   rtol=tol, atol=tol)

    print("KERNEL_OK")
</pallas_src>

<mosaic_0001>
module attributes {stable_mosaic.version = 11 : i64} {
  func.func @kernel(%arg0: memref<16x32xf32, #tpu.memory_space<vmem>>, %arg1: memref<32x128xf32, #tpu.memory_space<vmem>>, %arg2: memref<32x128xf32, #tpu.memory_space<vmem>>, %arg3: memref<1x128xf32, #tpu.memory_space<vmem>>, %arg4: memref<32x32xf32, #tpu.memory_space<vmem>>, %arg5: memref<1x32xf32, #tpu.memory_space<vmem>>, %arg6: memref<32x64xf32, #tpu.memory_space<vmem>>, %arg7: memref<1x64xf32, #tpu.memory_space<vmem>>, %arg8: memref<2x16xf32, #tpu.memory_space<vmem>>, %arg9: memref<16x32xf32, #tpu.memory_space<vmem>>, %arg10: memref<1x32xf32, #tpu.memory_space<vmem>>, %arg11: memref<1x32xf32, #tpu.memory_space<vmem>>, %arg12: memref<1x32xf32, #tpu.memory_space<vmem>>, %arg13: memref<32x32xf32, #tpu.memory_space<vmem>>, %arg14: memref<1x32xf32, #tpu.memory_space<vmem>>, %arg15: memref<1x32xf32, #tpu.memory_space<vmem>>, %arg16: memref<1x32xf32, #tpu.memory_space<vmem>>, %arg17: memref<32x32xf32, #tpu.memory_space<vmem>>, %arg18: memref<1x32xf32, #tpu.memory_space<vmem>>, %arg19: memref<1x32xf32, #tpu.memory_space<vmem>>, %arg20: memref<1x32xf32, #tpu.memory_space<vmem>>, %arg21: memref<32x32xf32, #tpu.memory_space<vmem>>, %arg22: memref<1x32xf32, #tpu.memory_space<vmem>>, %arg23: memref<32x128xf32, #tpu.memory_space<vmem>>, %arg24: memref<32x128xf32, #tpu.memory_space<vmem>>, %arg25: memref<1x128xf32, #tpu.memory_space<vmem>>, %arg26: memref<2x128xf32, #tpu.memory_space<vmem>>, %arg27: memref<2x128xf32, #tpu.memory_space<vmem>>) attributes {dimension_semantics = [], scalar_prefetch = 0 : i64, scratch_operands = 0 : i64, tpu.core_type = #tpu.core_type<tc>} {
    %c0 = arith.constant 0 : index
    %c0_0 = arith.constant 0 : index
    %0 = vector.load %arg0[%c0, %c0_0] : memref<16x32xf32, #tpu.memory_space<vmem>>, vector<16x32xf32>
    %c0_1 = arith.constant 0 : index
    %c0_2 = arith.constant 0 : index
    %1 = vector.load %arg1[%c0_1, %c0_2] : memref<32x128xf32, #tpu.memory_space<vmem>>, vector<32x128xf32>
    %cst = arith.constant dense<0.000000e+00> : vector<16x128xf32>
    %2 = tpu.matmul %0, %1, %cst {dimension_numbers = #tpu.dot_dimension_numbers<[1], [0], [0], [1], [0, 0, 1, 1], [], []>} : vector<16x32xf32>, vector<32x128xf32>, vector<16x128xf32> -> vector<16x128xf32>
    %c0_3 = arith.constant 0 : index
    %c0_4 = arith.constant 0 : index
    %3 = vector.load %arg3[%c0_3, %c0_4] : memref<1x128xf32, #tpu.memory_space<vmem>>, vector<1x128xf32>
    %4 = vector.broadcast %3 : vector<1x128xf32> to vector<16x128xf32>
    %5 = arith.addf %2, %4 : vector<16x128xf32>
    %c0_5 = arith.constant 0 : index
    %c0_6 = arith.constant 0 : index
    %6 = vector.load %arg2[%c0_5, %c0_6] : memref<32x128xf32, #tpu.memory_space<vmem>>, vector<32x128xf32>
    %cst_7 = arith.constant 0.000000e+00 : f32
    %7 = vector.broadcast %cst_7 : f32 to vector<2x32xf32>
    %cst_8 = arith.constant 0.000000e+00 : f32
    %8 = vector.broadcast %cst_8 : f32 to vector<2x32xf32>
    %9 = vector.extract_strided_slice %5 {offsets = [0, 0], sizes = [2, 128], strides = [1, 1]} : vector<16x128xf32> to vector<2x128xf32>
    %cst_9 = arith.constant dense<0.000000e+00> : vector<2x128xf32>
    %10 = tpu.matmul %7, %6, %cst_9 {dimension_numbers = #tpu.dot_dimension_numbers<[1], [0], [0], [1], [0, 0, 1, 1], [], []>} : vector<2x32xf32>, vector<32x128xf32>, vector<2x128xf32> -> vector<2x128xf32>
    %11 = arith.addf %9, %10 : vector<2x128xf32>
    %12 = vector.extract_strided_slice %11 {offsets = [0, 0], sizes = [2, 96], strides = [1, 1]} : vector<2x128xf32> to vector<2x96xf32>
    %13 = arith.negf %12 : vector<2x96xf32>
    %14 = math.exp %13 : vector<2x96xf32>
    %cst_10 = arith.constant 1.000000e+00 : f32
    %15 = vector.broadcast %cst_10 : f32 to vector<2x96xf32>
    %16 = arith.addf %15, %14 : vector<2x96xf32>
    %17 = arith.divf %15, %16 : vector<2x96xf32>
    %18 = vector.extract_strided_slice %11 {offsets = [0, 96], sizes = [2, 32], strides = [1, 1]} : vector<2x128xf32> to vector<2x32xf32>
    %19 = math.tanh %18 : vector<2x32xf32>
    %20 = vector.extract_strided_slice %17 {offsets = [0, 32], sizes = [2, 32], strides = [1, 1]} : vector<2x96xf32> to vector<2x32xf32>
    %21 = arith.mulf %20, %8 : vector<2x32xf32>
    %22 = vector.extract_strided_slice %17 {offsets = [0, 0], sizes = [2, 32], strides = [1, 1]} : vector<2x96xf32> to vector<2x32xf32>
    %23 = arith.mulf %22, %19 : vector<2x32xf32>
    %24 = arith.addf %21, %23 : vector<2x32xf32>
    %25 = vector.extract_strided_slice %17 {offsets = [0, 64], sizes = [2, 32], strides = [1, 1]} : vector<2x96xf32> to vector<2x32xf32>
    %26 = math.tanh %24 : vector<2x32xf32>
    %27 = arith.mulf %25, %26 : vector<2x32xf32>
    %28 = vector.extract_strided_slice %5 {offsets = [2, 0], sizes = [2, 128], strides = [1, 1]} : vector<16x128xf32> to vector<2x128xf32>
    %cst_11 = arith.constant dense<0.000000e+00> : vector<2x128xf32>
    %29 = tpu.matmul %27, %6, %cst_11 {dimension_numbers = #tpu.dot_dimension_numbers<[1], [0], [0], [1], [0, 0, 1, 1], [], []>} : vector<2x32xf32>, vector<32x128xf32>, vector<2x128xf32> -> vector<2x128xf32>
    %30 = arith.addf %28, %29 : vector<2x128xf32>
    %31 = vector.extract_strided_slice %30 {offsets = [0, 0], sizes = [2, 96], strides = [1, 1]} : vector<2x128xf32> to vector<2x96xf32>
    %32 = arith.negf %31 : vector<2x96xf32>
    %33 = math.exp %32 : vector<2x96xf32>
    %cst_12 = arith.constant 1.000000e+00 : f32
    %34 = vector.broadcast %cst_12 : f32 to vector<2x96xf32>
    %35 = arith.addf %34, %33 : vector<2x96xf32>
    %36 = arith.divf %34, %35 : vector<2x96xf32>
    %37 = vector.extract_strided_slice %30 {offsets = [0, 96], sizes = [2, 32], strides = [1, 1]} : vector<2x128xf32> to vector<2x32xf32>
    %38 = math.tanh %37 : vector<2x32xf32>
    %39 = vector.extract_strided_slice %36 {offsets = [0, 32], sizes = [2, 32], strides = [1, 1]} : vector<2x96xf32> to vector<2x32xf32>
    %40 = arith.mulf %39, %24 : vector<2x32xf32>
    %41 = vector.extract_strided_slice %36 {offsets = [0, 0], sizes = [2, 32], strides = [1, 1]} : vector<2x96xf32> to vector<2x32xf32>
    %42 = arith.mulf %41, %38 : vector<2x32xf32>
    %43 = arith.addf %40, %42 : vector<2x32xf32>
    %44 = vector.extract_strided_slice %36 {offsets = [0, 64], sizes = [2, 32], strides = [1, 1]} : vector<2x96xf32> to vector<2x32xf32>
    %45 = math.tanh %43 : vector<2x32xf32>
    %46 = arith.mulf %44, %45 : vector<2x32xf32>
    %47 = vector.extract_strided_slice %5 {offsets = [4, 0], sizes = [2, 128], strides = [1, 1]} : vector<16x128xf32> to vector<2x128xf32>
    %cst_13 = arith.constant dense<0.000000e+00> : vector<2x128xf32>
    %48 = tpu.matmul %46, %6, %cst_13 {dimension_numbers = #tpu.dot_dimension_numbers<[1], [0], [0], [1], [0, 0, 1, 1], [], []>} : vector<2x32xf32>, vector<32x128xf32>, vector<2x128xf32> -> vector<2x128xf32>
    %49 = arith.addf %47, %48 : vector<2x128xf32>
    %50 = vector.extract_strided_slice %49 {offsets = [0, 0], sizes = [2, 96], strides = [1, 1]} : vector<2x128xf32> to vector<2x96xf32>
    %51 = arith.negf %50 : vector<2x96xf32>
    %52 = math.exp %51 : vector<2x96xf32>
    %cst_14 = arith.constant 1.000000e+00 : f32
    %53 = vector.broadcast %cst_14 : f32 to vector<2x96xf32>
    %54 = arith.addf %53, %52 : vector<2x96xf32>
    %55 = arith.divf %53, %54 : vector<2x96xf32>
    %56 = vector.extract_strided_slice %49 {offsets = [0, 96], sizes = [2, 32], strides = [1, 1]} : vector<2x128xf32> to vector<2x32xf32>
    %57 = math.tanh %56 : vector<2x32xf32>
    %58 = vector.extract_strided_slice %55 {offsets = [0, 32], sizes = [2, 32], strides = [1, 1]} : vector<2x96xf32> to vector<2x32xf32>
    %59 = arith.mulf %58, %43 : vector<2x32xf32>
    %60 = vector.extract_strided_slice %55 {offsets = [0, 0], sizes = [2, 32], strides = [1, 1]} : vector<2x96xf32> to vector<2x32xf32>
    %61 = arith.mulf %60, %57 : vector<2x32xf32>
    %62 = arith.addf %59, %61 : vector<2x32xf32>
    %63 = vector.extract_strided_slice %55 {offsets = [0, 64], sizes = [2, 32], strides = [1, 1]} : vector<2x96xf32> to vector<2x32xf32>
    %64 = math.tanh %62 : vector<2x32xf32>
    %65 = arith.mulf %63, %64 : vector<2x32xf32>
    %66 = vector.extract_strided_slice %5 {offsets = [6, 0], sizes = [2, 128], strides = [1, 1]} : vector<16x128xf32> to vector<2x128xf32>
    %cst_15 = arith.constant dense<0.000000e+00> : vector<2x128xf32>
    %67 = tpu.matmul %65, %6, %cst_15 {dimension_numbers = #tpu.dot_dimension_numbers<[1], [0], [0], [1], [0, 0, 1, 1], [], []>} : vector<2x32xf32>, vector<32x128xf32>, vector<2x128xf32> -> vector<2x128xf32>
    %68 = arith.addf %66, %67 : vector<2x128xf32>
    %69 = vector.extract_strided_slice %68 {offsets = [0, 0], sizes = [2, 96], strides = [1, 1]} : vector<2x128xf32> to vector<2x96xf32>
    %70 = arith.negf %69 : vector<2x96xf32>
    %71 = math.exp %70 : vector<2x96xf32>
    %cst_16 = arith.constant 1.000000e+00 : f32
    %72 = vector.broadcast %cst_16 : f32 to vector<2x96xf32>
    %73 = arith.addf %72, %71 : vector<2x96xf32>
    %74 = arith.divf %72, %73 : vector<2x96xf32>
    %75 = vector.extract_strided_slice %68 {offsets = [0, 96], sizes = [2, 32], strides = [1, 1]} : vector<2x128xf32> to vector<2x32xf32>
    %76 = math.tanh %75 : vector<2x32xf32>
    %77 = vector.extract_strided_slice %74 {offsets = [0, 32], sizes = [2, 32], strides = [1, 1]} : vector<2x96xf32> to vector<2x32xf32>
    %78 = arith.mulf %77, %62 : vector<2x32xf32>
    %79 = vector.extract_strided_slice %74 {offsets = [0, 0], sizes = [2, 32], strides = [1, 1]} : vector<2x96xf32> to vector<2x32xf32>
    %80 = arith.mulf %79, %76 : vector<2x32xf32>
    %81 = arith.addf %78, %80 : vector<2x32xf32>
    %82 = vector.extract_strided_slice %74 {offsets = [0, 64], sizes = [2, 32], strides = [1, 1]} : vector<2x96xf32> to vector<2x32xf32>
    %83 = math.tanh %81 : vector<2x32xf32>
    %84 = arith.mulf %82, %83 : vector<2x32xf32>
    %85 = vector.extract_strided_slice %5 {offsets = [8, 0], sizes = [2, 128], strides = [1, 1]} : vector<16x128xf32> to vector<2x128xf32>
    %cst_17 = arith.constant dense<0.000000e+00> : vector<2x128xf32>
    %86 = tpu.matmul %84, %6, %cst_17 {dimension_numbers = #tpu.dot_dimension_numbers<[1], [0], [0], [1], [0, 0, 1, 1], [], []>} : vector<2x32xf32>, vector<32x128xf32>, vector<2x128xf32> -> vector<2x128xf32>
    %87 = arith.addf %85, %86 : vector<2x128xf32>
    %88 = vector.extract_strided_slice %87 {offsets = [0, 0], sizes = [2, 96], strides = [1, 1]} : vector<2x128xf32> to vector<2x96xf32>
    %89 = arith.negf %88 : vector<2x96xf32>
    %90 = math.exp %89 : vector<2x96xf32>
    %cst_18 = arith.constant 1.000000e+00 : f32
    %91 = vector.broadcast %cst_18 : f32 to vector<2x96xf32>
    %92 = arith.addf %91, %90 : vector<2x96xf32>
    %93 = arith.divf %91, %92 : vector<2x96xf32>
    %94 = vector.extract_strided_slice %87 {offsets = [0, 96], sizes = [2, 32], strides = [1, 1]} : vector<2x128xf32> to vector<2x32xf32>
    %95 = math.tanh %94 : vector<2x32xf32>
    %96 = vector.extract_strided_slice %93 {offsets = [0, 32], sizes = [2, 32], strides = [1, 1]} : vector<2x96xf32> to vector<2x32xf32>
    %97 = arith.mulf %96, %81 : vector<2x32xf32>
    %98 = vector.extract_strided_slice %93 {offsets = [0, 0], sizes = [2, 32], strides = [1, 1]} : vector<2x96xf32> to vector<2x32xf32>
    %99 = arith.mulf %98, %95 : vector<2x32xf32>
    %100 = arith.addf %97, %99 : vector<2x32xf32>
    %101 = vector.extract_strided_slice %93 {offsets = [0, 64], sizes = [2, 32], strides = [1, 1]} : vector<2x96xf32> to vector<2x32xf32>
    %102 = math.tanh %100 : vector<2x32xf32>
    %103 = arith.mulf %101, %102 : vector<2x32xf32>
    %104 = vector.extract_strided_slice %5 {offsets = [10, 0], sizes = [2, 128], strides = [1, 1]} : vector<16x128xf32> to vector<2x128xf32>
    %cst_19 = arith.constant dense<0.000000e+00> : vector<2x128xf32>
    %105 = tpu.matmul %103, %6, %cst_19 {dimension_numbers = #tpu.dot_dimension_numbers<[1], [0], [0], [1], [0, 0, 1, 1], [], []>} : vector<2x32xf32>, vector<32x128xf32>, vector<2x128xf32> -> vector<2x128xf32>
    %106 = arith.addf %104, %105 : vector<2x128xf32>
    %107 = vector.extract_strided_slice %106 {offsets = [0, 0], sizes = [2, 96], strides = [1, 1]} : vector<2x128xf32> to vector<2x96xf32>
    %108 = arith.negf %107 : vector<2x96xf32>
    %109 = math.exp %108 : vector<2x96xf32>
    %cst_20 = arith.constant 1.000000e+00 : f32
    %110 = vector.broadcast %cst_20 : f32 to vector<2x96xf32>
    %111 = arith.addf %110, %109 : vector<2x96xf32>
    %112 = arith.divf %110, %111 : vector<2x96xf32>
    %113 = vector.extract_strided_slice %106 {offsets = [0, 96], sizes = [2, 32], strides = [1, 1]} : vector<2x128xf32> to vector<2x32xf32>
    %114 = math.tanh %113 : vector<2x32xf32>
    %115 = vector.extract_strided_slice %112 {offsets = [0, 32], sizes = [2, 32], strides = [1, 1]} : vector<2x96xf32> to vector<2x32xf32>
    %116 = arith.mulf %115, %100 : vector<2x32xf32>
    %117 = vector.extract_strided_slice %112 {offsets = [0, 0], sizes = [2, 32], strides = [1, 1]} : vector<2x96xf32> to vector<2x32xf32>
    %118 = arith.mulf %117, %114 : vector<2x32xf32>
    %119 = arith.addf %116, %118 : vector<2x32xf32>
    %120 = vector.extract_strided_slice %112 {offsets = [0, 64], sizes = [2, 32], strides = [1, 1]} : vector<2x96xf32> to vector<2x32xf32>
    %121 = math.tanh %119 : vector<2x32xf32>
    %122 = arith.mulf %120, %121 : vector<2x32xf32>
    %123 = vector.extract_strided_slice %5 {offsets = [12, 0], sizes = [2, 128], strides = [1, 1]} : vector<16x128xf32> to vector<2x128xf32>
    %cst_21 = arith.constant dense<0.000000e+00> : vector<2x128xf32>
    %124 = tpu.matmul %122, %6, %cst_21 {dimension_numbers = #tpu.dot_dimension_numbers<[1], [0], [0], [1], [0, 0, 1, 1], [], []>} : vector<2x32xf32>, vector<32x128xf32>, vector<2x128xf32> -> vector<2x128xf32>
    %125 = arith.addf %123, %124 : vector<2x128xf32>
    %126 = vector.extract_strided_slice %125 {offsets = [0, 0], sizes = [2, 96], strides = [1, 1]} : vector<2x128xf32> to vector<2x96xf32>
    %127 = arith.negf %126 : vector<2x96xf32>
    %128 = math.exp %127 : vector<2x96xf32>
    %cst_22 = arith.constant 1.000000e+00 : f32
    %129 = vector.broadcast %cst_22 : f32 to vector<2x96xf32>
    %130 = arith.addf %129, %128 : vector<2x96xf32>
    %131 = arith.divf %129, %130 : vector<2x96xf32>
    %132 = vector.extract_strided_slice %125 {offsets = [0, 96], sizes = [2, 32], strides = [1, 1]} : vector<2x128xf32> to vector<2x32xf32>
    %133 = math.tanh %132 : vector<2x32xf32>
    %134 = vector.extract_strided_slice %131 {offsets = [0, 32], sizes = [2, 32], strides = [1, 1]} : vector<2x96xf32> to vector<2x32xf32>
    %135 = arith.mulf %134, %119 : vector<2x32xf32>
    %136 = vector.extract_strided_slice %131 {offsets = [0, 0], sizes = [2, 32], strides = [1, 1]} : vector<2x96xf32> to vector<2x32xf32>
    %137 = arith.mulf %136, %133 : vector<2x32xf32>
    %138 = arith.addf %135, %137 : vector<2x32xf32>
    %139 = vector.extract_strided_slice %131 {offsets = [0, 64], sizes = [2, 32], strides = [1, 1]} : vector<2x96xf32> to vector<2x32xf32>
    %140 = math.tanh %138 : vector<2x32xf32>
    %141 = arith.mulf %139, %140 : vector<2x32xf32>
    %142 = vector.extract_strided_slice %5 {offsets = [14, 0], sizes = [2, 128], strides = [1, 1]} : vector<16x128xf32> to vector<2x128xf32>
    %cst_23 = arith.constant dense<0.000000e+00> : vector<2x128xf32>
    %143 = tpu.matmul %141, %6, %cst_23 {dimension_numbers = #tpu.dot_dimension_numbers<[1], [0], [0], [1], [0, 0, 1, 1], [], []>} : vector<2x32xf32>, vector<32x128xf32>, vector<2x128xf32> -> vector<2x128xf32>
    %144 = arith.addf %142, %143 : vector<2x128xf32>
    %145 = vector.extract_strided_slice %144 {offsets = [0, 0], sizes = [2, 96], strides = [1, 1]} : vector<2x128xf32> to vector<2x96xf32>
    %146 = arith.negf %145 : vector<2x96xf32>
    %147 = math.exp %146 : vector<2x96xf32>
    %cst_24 = arith.constant 1.000000e+00 : f32
    %148 = vector.broadcast %cst_24 : f32 to vector<2x96xf32>
    %149 = arith.addf %148, %147 : vector<2x96xf32>
    %150 = arith.divf %148, %149 : vector<2x96xf32>
    %151 = vector.extract_strided_slice %144 {offsets = [0, 96], sizes = [2, 32], strides = [1, 1]} : vector<2x128xf32> to vector<2x32xf32>
    %152 = math.tanh %151 : vector<2x32xf32>
    %153 = vector.extract_strided_slice %150 {offsets = [0, 32], sizes = [2, 32], strides = [1, 1]} : vector<2x96xf32> to vector<2x32xf32>
    %154 = arith.mulf %153, %138 : vector<2x32xf32>
    %155 = vector.extract_strided_slice %150 {offsets = [0, 0], sizes = [2, 32], strides = [1, 1]} : vector<2x96xf32> to vector<2x32xf32>
    %156 = arith.mulf %155, %152 : vector<2x32xf32>
    %157 = arith.addf %154, %156 : vector<2x32xf32>
    %158 = vector.extract_strided_slice %150 {offsets = [0, 64], sizes = [2, 32], strides = [1, 1]} : vector<2x96xf32> to vector<2x32xf32>
    %159 = math.tanh %157 : vector<2x32xf32>
    %160 = arith.mulf %158, %159 : vector<2x32xf32>
    %c0_25 = arith.constant 0 : index
    %c0_26 = arith.constant 0 : index
    %161 = vector.load %arg4[%c0_25, %c0_26] : memref<32x32xf32, #tpu.memory_space<vmem>>, vector<32x32xf32>
    %cst_27 = arith.constant dense<0.000000e+00> : vector<2x32xf32>
    %162 = tpu.matmul %160, %161, %cst_27 {dimension_numbers = #tpu.dot_dimension_numbers<[1], [0], [0], [1], [0, 0, 1, 1], [], []>} : vector<2x32xf32>, vector<32x32xf32>, vector<2x32xf32> -> vector<2x32xf32>
    %c0_28 = arith.constant 0 : index
    %c0_29 = arith.constant 0 : index
    %163 = vector.load %arg5[%c0_28, %c0_29] : memref<1x32xf32, #tpu.memory_space<vmem>>, vector<1x32xf32>
    %164 = vector.broadcast %163 : vector<1x32xf32> to vector<2x32xf32>
    %165 = arith.addf %162, %164 : vector<2x32xf32>
    %cst_30 = arith.constant 0.000000e+00 : f32
    %166 = vector.broadcast %cst_30 : f32 to vector<2x32xf32>
    %167 = arith.maximumf %165, %166 : vector<2x32xf32>
    %c0_31 = arith.constant 0 : index
    %c0_32 = arith.constant 0 : index
    %168 = vector.load %arg6[%c0_31, %c0_32] : memref<32x64xf32, #tpu.memory_space<vmem>>, vector<32x64xf32>
    %cst_33 = arith.constant dense<0.000000e+00> : vector<2x64xf32>
    %169 = tpu.matmul %167, %168, %cst_33 {dimension_numbers = #tpu.dot_dimension_numbers<[1], [0], [0], [1], [0, 0, 1, 1], [], []>} : vector<2x32xf32>, vector<32x64xf32>, vector<2x64xf32> -> vector<2x64xf32>
    %c0_34 = arith.constant 0 : index
    %c0_35 = arith.constant 0 : index
    %170 = vector.load %arg7[%c0_34, %c0_35] : memref<1x64xf32, #tpu.memory_space<vmem>>, vector<1x64xf32>
    %171 = vector.broadcast %170 : vector<1x64xf32> to vector<2x64xf32>
    %172 = arith.addf %169, %171 : vector<2x64xf32>
    %173 = vector.extract_strided_slice %172 {offsets = [0, 0], sizes = [2, 32], strides = [1, 1]} : vector<2x64xf32> to vector<2x32xf32>
    %174 = math.tanh %173 : vector<2x32xf32>
    %cst_36 = arith.constant 1.000000e-01 : f32
    %175 = vector.broadcast %cst_36 : f32 to vector<2x32xf32>
    %176 = arith.mulf %175, %174 : vector<2x32xf32>
    %cst_37 = arith.constant 1.000000e+00 : f32
    %177 = vector.broadcast %cst_37 : f32 to vector<2x32xf32>
    %178 = arith.addf %177, %176 : vector<2x32xf32>
    %179 = vector.extract_strided_slice %172 {offsets = [0, 32], sizes = [2, 32], strides = [1, 1]} : vector<2x64xf32> to vector<2x32xf32>
    %c0_38 = arith.constant 0 : index
    %c0_39 = arith.constant 0 : index
    %180 = vector.load %arg8[%c0_38, %c0_39] : memref<2x16xf32, #tpu.memory_space<vmem>>, vector<2x16xf32>
    %c0_40 = arith.constant 0 : index
    %c0_41 = arith.constant 0 : index
    %181 = vector.load %arg9[%c0_40, %c0_41] : memref<16x32xf32, #tpu.memory_space<vmem>>, vector<16x32xf32>
    %cst_42 = arith.constant dense<0.000000e+00> : vector<2x32xf32>
    %182 = tpu.matmul %180, %181, %cst_42 {dimension_numbers = #tpu.dot_dimension_numbers<[1], [0], [0], [1], [0, 0, 1, 1], [], []>} : vector<2x16xf32>, vector<16x32xf32>, vector<2x32xf32> -> vector<2x32xf32>
    %c0_43 = arith.constant 0 : index
    %c0_44 = arith.constant 0 : index
    %183 = vector.load %arg10[%c0_43, %c0_44] : memref<1x32xf32, #tpu.memory_space<vmem>>, vector<1x32xf32>
    %184 = vector.broadcast %183 : vector<1x32xf32> to vector<2x32xf32>
    %185 = arith.addf %182, %184 : vector<2x32xf32>
    %cst_45 = arith.constant 0.000000e+00 : f32
    %186 = vector.broadcast %cst_45 : f32 to vector<2x32xf32>
    %187 = arith.maximumf %185, %186 : vector<2x32xf32>
    %188 = arith.mulf %187, %178 : vector<2x32xf32>
    %189 = arith.addf %188, %179 : vector<2x32xf32>
    %cst_46 = arith.constant dense<0.000000e+00> : vector<2xf32>
    %190 = vector.multi_reduction <add>, %189, %cst_46 [1] : vector<2x32xf32> to vector<2xf32>
    %191 = vector.shape_cast %190 : vector<2xf32> to vector<2x1xf32>
    %cst_47 = arith.constant 3.200000e+01 : f32
    %192 = vector.broadcast %cst_47 : f32 to vector<2x1xf32>
    %193 = arith.divf %191, %192 : vector<2x1xf32>
    %194 = vector.broadcast %193 : vector<2x1xf32> to vector<2x32xf32>
    %195 = arith.subf %189, %194 : vector<2x32xf32>
    %196 = arith.mulf %195, %195 : vector<2x32xf32>
    %cst_48 = arith.constant dense<0.000000e+00> : vector<2xf32>
    %197 = vector.multi_reduction <add>, %196, %cst_48 [1] : vector<2x32xf32> to vector<2xf32>
    %198 = vector.shape_cast %197 : vector<2xf32> to vector<2x1xf32>
    %cst_49 = arith.constant 3.200000e+01 : f32
    %199 = vector.broadcast %cst_49 : f32 to vector<2x1xf32>
    %200 = arith.divf %198, %199 : vector<2x1xf32>
    %cst_50 = arith.constant 9.99999974E-6 : f32
    %201 = vector.broadcast %cst_50 : f32 to vector<2x1xf32>
    %202 = arith.addf %200, %201 : vector<2x1xf32>
    %203 = math.rsqrt %202 : vector<2x1xf32>
    %204 = vector.broadcast %203 : vector<2x1xf32> to vector<2x32xf32>
    %205 = arith.mulf %195, %204 : vector<2x32xf32>
    %c0_51 = arith.constant 0 : index
    %c0_52 = arith.constant 0 : index
    %206 = vector.load %arg11[%c0_51, %c0_52] : memref<1x32xf32, #tpu.memory_space<vmem>>, vector<1x32xf32>
    %207 = vector.broadcast %206 : vector<1x32xf32> to vector<2x32xf32>
    %208 = arith.mulf %205, %207 : vector<2x32xf32>
    %c0_53 = arith.constant 0 : index
    %c0_54 = arith.constant 0 : index
    %209 = vector.load %arg12[%c0_53, %c0_54] : memref<1x32xf32, #tpu.memory_space<vmem>>, vector<1x32xf32>
    %210 = vector.broadcast %209 : vector<1x32xf32> to vector<2x32xf32>
    %211 = arith.addf %208, %210 : vector<2x32xf32>
    %c0_55 = arith.constant 0 : index
    %c0_56 = arith.constant 0 : index
    %212 = vector.load %arg13[%c0_55, %c0_56] : memref<32x32xf32, #tpu.memory_space<vmem>>, vector<32x32xf32>
    %cst_57 = arith.constant dense<0.000000e+00> : vector<2x32xf32>
    %213 = tpu.matmul %211, %212, %cst_57 {dimension_numbers = #tpu.dot_dimension_numbers<[1], [0], [0], [1], [0, 0, 1, 1], [], []>} : vector<2x32xf32>, vector<32x32xf32>, vector<2x32xf32> -> vector<2x32xf32>
    %c0_58 = arith.constant 0 : index
    %c0_59 = arith.constant 0 : index
    %214 = vector.load %arg14[%c0_58, %c0_59] : memref<1x32xf32, #tpu.memory_space<vmem>>, vector<1x32xf32>
    %215 = vector.broadcast %214 : vector<1x32xf32> to vector<2x32xf32>
    %216 = arith.addf %213, %215 : vector<2x32xf32>
    %cst_60 = arith.constant 0.000000e+00 : f32
    %217 = vector.broadcast %cst_60 : f32 to vector<2x32xf32>
    %218 = arith.maximumf %216, %217 : vector<2x32xf32>
    %219 = arith.mulf %218, %178 : vector<2x32xf32>
    %220 = arith.addf %219, %179 : vector<2x32xf32>
    %cst_61 = arith.constant dense<0.000000e+00> : vector<2xf32>
    %221 = vector.multi_reduction <add>, %220, %cst_61 [1] : vector<2x32xf32> to vector<2xf32>
    %222 = vector.shape_cast %221 : vector<2xf32> to vector<2x1xf32>
    %cst_62 = arith.constant 3.200000e+01 : f32
    %223 = vector.broadcast %cst_62 : f32 to vector<2x1xf32>
    %224 = arith.divf %222, %223 : vector<2x1xf32>
    %225 = vector.broadcast %224 : vector<2x1xf32> to vector<2x32xf32>
    %226 = arith.subf %220, %225 : vector<2x32xf32>
    %227 = arith.mulf %226, %226 : vector<2x32xf32>
    %cst_63 = arith.constant dense<0.000000e+00> : vector<2xf32>
    %228 = vector.multi_reduction <add>, %227, %cst_63 [1] : vector<2x32xf32> to vector<2xf32>
    %229 = vector.shape_cast %228 : vector<2xf32> to vector<2x1xf32>
    %cst_64 = arith.constant 3.200000e+01 : f32
    %230 = vector.broadcast %cst_64 : f32 to vector<2x1xf32>
    %231 = arith.divf %229, %230 : vector<2x1xf32>
    %cst_65 = arith.constant 9.99999974E-6 : f32
    %232 = vector.broadcast %cst_65 : f32 to vector<2x1xf32>
    %233 = arith.addf %231, %232 : vector<2x1xf32>
    %234 = math.rsqrt %233 : vector<2x1xf32>
    %235 = vector.broadcast %234 : vector<2x1xf32> to vector<2x32xf32>
    %236 = arith.mulf %226, %235 : vector<2x32xf32>
    %c0_66 = arith.constant 0 : index
    %c0_67 = arith.constant 0 : index
    %237 = vector.load %arg15[%c0_66, %c0_67] : memref<1x32xf32, #tpu.memory_space<vmem>>, vector<1x32xf32>
    %238 = vector.broadcast %237 : vector<1x32xf32> to vector<2x32xf32>
    %239 = arith.mulf %236, %238 : vector<2x32xf32>
    %c0_68 = arith.constant 0 : index
    %c0_69 = arith.constant 0 : index
    %240 = vector.load %arg16[%c0_68, %c0_69] : memref<1x32xf32, #tpu.memory_space<vmem>>, vector<1x32xf32>
    %241 = vector.broadcast %240 : vector<1x32xf32> to vector<2x32xf32>
    %242 = arith.addf %239, %241 : vector<2x32xf32>
    %c0_70 = arith.constant 0 : index
    %c0_71 = arith.constant 0 : index
    %243 = vector.load %arg17[%c0_70, %c0_71] : memref<32x32xf32, #tpu.memory_space<vmem>>, vector<32x32xf32>
    %cst_72 = arith.constant dense<0.000000e+00> : vector<2x32xf32>
    %244 = tpu.matmul %242, %243, %cst_72 {dimension_numbers = #tpu.dot_dimension_numbers<[1], [0], [0], [1], [0, 0, 1, 1], [], []>} : vector<2x32xf32>, vector<32x32xf32>, vector<2x32xf32> -> vector<2x32xf32>
    %c0_73 = arith.constant 0 : index
    %c0_74 = arith.constant 0 : index
    %245 = vector.load %arg18[%c0_73, %c0_74] : memref<1x32xf32, #tpu.memory_space<vmem>>, vector<1x32xf32>
    %246 = vector.broadcast %245 : vector<1x32xf32> to vector<2x32xf32>
    %247 = arith.addf %244, %246 : vector<2x32xf32>
    %cst_75 = arith.constant 0.000000e+00 : f32
    %248 = vector.broadcast %cst_75 : f32 to vector<2x32xf32>
    %249 = arith.maximumf %247, %248 : vector<2x32xf32>
    %250 = arith.mulf %249, %178 : vector<2x32xf32>
    %251 = arith.addf %250, %179 : vector<2x32xf32>
    %cst_76 = arith.constant dense<0.000000e+00> : vector<2xf32>
    %252 = vector.multi_reduction <add>, %251, %cst_76 [1] : vector<2x32xf32> to vector<2xf32>
    %253 = vector.shape_cast %252 : vector<2xf32> to vector<2x1xf32>
    %cst_77 = arith.constant 3.200000e+01 : f32
    %254 = vector.broadcast %cst_77 : f32 to vector<2x1xf32>
    %255 = arith.divf %253, %254 : vector<2x1xf32>
    %256 = vector.broadcast %255 : vector<2x1xf32> to vector<2x32xf32>
    %257 = arith.subf %251, %256 : vector<2x32xf32>
    %258 = arith.mulf %257, %257 : vector<2x32xf32>
    %cst_78 = arith.constant dense<0.000000e+00> : vector<2xf32>
    %259 = vector.multi_reduction <add>, %258, %cst_78 [1] : vector<2x32xf32> to vector<2xf32>
    %260 = vector.shape_cast %259 : vector<2xf32> to vector<2x1xf32>
    %cst_79 = arith.constant 3.200000e+01 : f32
    %261 = vector.broadcast %cst_79 : f32 to vector<2x1xf32>
    %262 = arith.divf %260, %261 : vector<2x1xf32>
    %cst_80 = arith.constant 9.99999974E-6 : f32
    %263 = vector.broadcast %cst_80 : f32 to vector<2x1xf32>
    %264 = arith.addf %262, %263 : vector<2x1xf32>
    %265 = math.rsqrt %264 : vector<2x1xf32>
    %266 = vector.broadcast %265 : vector<2x1xf32> to vector<2x32xf32>
    %267 = arith.mulf %257, %266 : vector<2x32xf32>
    %c0_81 = arith.constant 0 : index
    %c0_82 = arith.constant 0 : index
    %268 = vector.load %arg19[%c0_81, %c0_82] : memref<1x32xf32, #tpu.memory_space<vmem>>, vector<1x32xf32>
    %269 = vector.broadcast %268 : vector<1x32xf32> to vector<2x32xf32>
    %270 = arith.mulf %267, %269 : vector<2x32xf32>
    %c0_83 = arith.constant 0 : index
    %c0_84 = arith.constant 0 : index
    %271 = vector.load %arg20[%c0_83, %c0_84] : memref<1x32xf32, #tpu.memory_space<vmem>>, vector<1x32xf32>
    %272 = vector.broadcast %271 : vector<1x32xf32> to vector<2x32xf32>
    %273 = arith.addf %270, %272 : vector<2x32xf32>
    %c0_85 = arith.constant 0 : index
    %c0_86 = arith.constant 0 : index
    %274 = vector.load %arg21[%c0_85, %c0_86] : memref<32x32xf32, #tpu.memory_space<vmem>>, vector<32x32xf32>
    %cst_87 = arith.constant dense<0.000000e+00> : vector<2x32xf32>
    %275 = tpu.matmul %273, %274, %cst_87 {dimension_numbers = #tpu.dot_dimension_numbers<[1], [0], [0], [1], [0, 0, 1, 1], [], []>} : vector<2x32xf32>, vector<32x32xf32>, vector<2x32xf32> -> vector<2x32xf32>
    %c0_88 = arith.constant 0 : index
    %c0_89 = arith.constant 0 : index
    %276 = vector.load %arg22[%c0_88, %c0_89] : memref<1x32xf32, #tpu.memory_space<vmem>>, vector<1x32xf32>
    %277 = vector.broadcast %276 : vector<1x32xf32> to vector<2x32xf32>
    %278 = arith.addf %275, %277 : vector<2x32xf32>
    %cst_90 = arith.constant 0.000000e+00 : f32
    %279 = vector.broadcast %cst_90 : f32 to vector<2x32xf32>
    %280 = arith.maximumf %278, %279 : vector<2x32xf32>
    %c0_91 = arith.constant 0 : index
    %c0_92 = arith.constant 0 : index
    %281 = vector.load %arg23[%c0_91, %c0_92] : memref<32x128xf32, #tpu.memory_space<vmem>>, vector<32x128xf32>
    %cst_93 = arith.constant dense<0.000000e+00> : vector<2x128xf32>
    %282 = tpu.matmul %280, %281, %cst_93 {dimension_numbers = #tpu.dot_dimension_numbers<[1], [0], [0], [1], [0, 0, 1, 1], [], []>} : vector<2x32xf32>, vector<32x128xf32>, vector<2x128xf32> -> vector<2x128xf32>
    %c0_94 = arith.constant 0 : index
    %c0_95 = arith.constant 0 : index
    %283 = vector.load %arg24[%c0_94, %c0_95] : memref<32x128xf32, #tpu.memory_space<vmem>>, vector<32x128xf32>
    %cst_96 = arith.constant dense<0.000000e+00> : vector<2x128xf32>
    %284 = tpu.matmul %273, %283, %cst_96 {dimension_numbers = #tpu.dot_dimension_numbers<[1], [0], [0], [1], [0, 0, 1, 1], [], []>} : vector<2x32xf32>, vector<32x128xf32>, vector<2x128xf32> -> vector<2x128xf32>
    %285 = arith.addf %282, %284 : vector<2x128xf32>
    %c0_97 = arith.constant 0 : index
    %c0_98 = arith.constant 0 : index
    %286 = vector.load %arg25[%c0_97, %c0_98] : memref<1x128xf32, #tpu.memory_space<vmem>>, vector<1x128xf32>
    %287 = vector.broadcast %286 : vector<1x128xf32> to vector<2x128xf32>
    %288 = arith.addf %285, %287 : vector<2x128xf32>
    %c0_99 = arith.constant 0 : index
    %c0_100 = arith.constant 0 : index
    %289 = vector.load %arg26[%c0_99, %c0_100] : memref<2x128xf32, #tpu.memory_space<vmem>>, vector<2x128xf32>
    %290 = arith.addf %288, %289 : vector<2x128xf32>
    %c0_101 = arith.constant 0 : index
    %c0_102 = arith.constant 0 : index
    %291 = vector.load %arg27[%c0_101, %c0_102] : memref<2x128xf32, #tpu.memory_space<vmem>>, vector<2x128xf32>
    tpu.vector_store %arg27[%c0_101, %c0_102], %290 {strides = array<i32>} : memref<2x128xf32, #tpu.memory_space<vmem>>, vector<2x128xf32>,
    return
  }
}

</mosaic_0001>

<bundles_post_ra>
// kernel: meta_learning_policy_forward.1
= control target key start
LH: loop header
LB: loop body
LE: loop exit
PB: predicated region body
PF: predicated region fallthrough
CT: control target
= control target key end

     0   :  { %v2190_v2 = vmov 0.0   ;;  %vm2191_vm0 = vmmov 0   ;;  %vm99_vm1 = vcmask 261120   ;;  %vm1212_vm2 = vcmask 130048   ;;  %s2717_s1 = inlined_call_operand.vmem [shape: f32[32,128], index: 1, kind: input, shape index: {}]   ;;  %s2718_s2 = inlined_call_operand.vmem [shape: f32[32,128], index: 2, kind: input, shape index: {}]   ;;  %s2719_s0 = inlined_call_operand.vmem [shape: f32[16,32], index: 0, kind: input, shape index: {}]   ;;  %s2720_s3 = inlined_call_operand.vmem [shape: f32[1,128], index: 3, kind: input, shape index: {}]   ;;  %s2721_s4 = inlined_call_operand.vmem [shape: f32[32,32], index: 4, kind: input, shape index: {}]   ;;  %s2722_s6 = inlined_call_operand.vmem [shape: f32[32,64], index: 6, kind: input, shape index: {}]   ;;  %s2723_s9 = inlined_call_operand.vmem [shape: f32[16,32], index: 9, kind: input, shape index: {}]   ;;  %s2724_s8 = inlined_call_operand.vmem [shape: f32[2,16], index: 8, kind: input, shape index: {}]   ;;  %s2725_s5 = inlined_call_operand.vmem [shape: f32[1,32], index: 5, kind: input, shape index: {}]   ;;  %s2726_s7 = inlined_call_operand.vmem [shape: f32[1,64], index: 7, kind: input, shape index: {}]   ;;  %s2727_s10 = inlined_call_operand.vmem [shape: f32[1,32], index: 10, kind: input, shape index: {}]   ;;  %s2728_s13 = inlined_call_operand.vmem [shape: f32[32,32], index: 13, kind: input, shape index: {}]   ;;  %s2729_s11 = inlined_call_operand.vmem [shape: f32[1,32], index: 11, kind: input, shape index: {}]   ;;  %s2730_s12 = inlined_call_operand.vmem [shape: f32[1,32], index: 12, kind: input, shape index: {}]   ;;  %s2731_s14 = inlined_call_operand.vmem [shape: f32[1,32], index: 14, kind: input, shape index: {}]   ;;  %s2732_s17 = inlined_call_operand.vmem [shape: f32[32,32], index: 17, kind: input, shape index: {}]   ;;  %s2733_s15 = inlined_call_operand.vmem [shape: f32[1,32], index: 15, kind: input, shape index: {}]   ;;  %s2734_s16 = inlined_call_operand.vmem [shape: f32[1,32], index: 16, kind: input, shape index: {}]   ;;  %s2735_s18 = inlined_call_operand.vmem [shape: f32[1,32], index: 18, kind: input, shape index: {}]   ;;  %s2736_s21 = inlined_call_operand.vmem [shape: f32[32,32], index: 21, kind: input, shape index: {}]   ;;  %s2737_s24 = inlined_call_operand.vmem [shape: f32[32,128], index: 24, kind: input, shape index: {}]   ;;  %s2738_s19 = inlined_call_operand.vmem [shape: f32[1,32], index: 19, kind: input, shape index: {}]   ;;  %s2739_s20 = inlined_call_operand.vmem [shape: f32[1,32], index: 20, kind: input, shape index: {}]   ;;  %s2740_s23 = inlined_call_operand.vmem [shape: f32[32,128], index: 23, kind: input, shape index: {}]   ;;  %s2741_s22 = inlined_call_operand.vmem [shape: f32[1,32], index: 22, kind: input, shape index: {}]   ;;  %s2742_s25 = inlined_call_operand.vmem [shape: f32[1,128], index: 25, kind: input, shape index: {}]   ;;  %s2743_s26 = inlined_call_operand.vmem [shape: f32[2,128], index: 26, kind: input, shape index: {}]   ;;  %s2744_s27 = inlined_call_operand.vmem [shape: f32[2,128], index: 27, kind: output, shape index: {}]  }
   0x1   :  { %2752 = sst [smem:[#allocation2_spill]] %s2717_s1  ;;  %1941 = vmatprep.subr.mxu1 %v2190_v2  ;;  %1949 = vmatprep.mubr.msk.f32.mxu1 %vm2191_vm0, %v2190_v2  ;;  %vm1293_vm3 = vcmask 254976  }
   0x2   :  { %2753 = sst [smem:[#allocation3_spill]] %s2718_s2 }
   0x3   :  { %2754 = sst [smem:[#allocation4_spill]] %s2719_s0 }
   0x4   :  { %2755 = sst [smem:[#allocation5_spill]] %s2720_s3 }
   0x5   :  { %2756 = sst [smem:[#allocation6_spill]] %s2721_s4 }
   0x6   :  { %2757 = sst [smem:[#allocation7_spill]] %s2722_s6 }
   0x7   :  { %2758 = sst [smem:[#allocation8_spill]] %s2723_s9  ;;  %s2192_s9 = smov 32  }
   0x8   :  { %2759 = sst [smem:[#allocation9_spill]] %s2724_s8 }
   0x9   :  { %2760 = sst [smem:[#allocation10_spill]] %s2725_s5 }
   0xa   :  { %2761 = sst [smem:[#allocation11_spill]] %s2726_s7 }
   0xb   :  { %2762 = sst [smem:[#allocation12_spill]] %s2727_s10 }
   0xc   :  { %2763 = sst [smem:[#allocation13_spill]] %s2728_s13  ;;  %s2193_s13 = smov 64  }
   0xd   :  { %s2764_s5 = sld [smem:[#allocation2_spill]] }
   0xe   :  { %s2765_s1 = sld [smem:[#allocation3_spill]] }
   0xf   :  { %s2766_s3 = sld [smem:[#allocation4_spill]] }
  0x10   :  { %s2767_s2 = sld [smem:[#allocation5_spill]] }
  0x11   :  { %s2768_s8 = sld [smem:[#allocation6_spill]] }
  0x12   :  { %s2770_s7 = sld [smem:[#allocation8_spill]] }
  0x13   :  { %v91_v0 = vld [vmem:[%s2764_s5 + $0x18] sm:$0xff]  ;;  %v90_v1 = vld [vmem:[%s2764_s5 + $0x10] sm:$0xff]  ;;  %v89_v5 = vld [vmem:[%s2764_s5 + $0x8] sm:$0xff]  ;;  %s2775_s10 = sld [smem:[#allocation13_spill]] }
  0x14   :  { %v2345_v3 = vld [vmem:[%s2765_s1 + $0x18] sm:$0xff]  ;;  %1930 = vmatprep.subr.mxu0 %v91_v0  ;;  %v2353_v4 = vld [vmem:[%s2765_s1 + $0x10] sm:$0xff]  ;;  %v2366_v7 = vld [vmem:[%s2765_s1 + $0x8] sm:$0xff] }
  0x15   :  { %1942 = vmatpush3.msra.mxu1 %v2345_v3  ;;  %1931 = vmatpush3.msra.mxu0 %v91_v0  ;;  %v86_v6 = vld [vmem:[%s2766_s3] sm:$0xff]  ;;  %v87_v10 = vld [vmem:[%s2766_s3 + $0x8] sm:$0xff] }
  0x16   :  { %1943 = vmatprep.subr.mxu1 %v2190_v2  ;;  %1932 = vmatprep.subr.mxu0 %v90_v1  ;;  %v88_v8 = vld [vmem:[%s2764_s5] sm:$0xff]  ;;  %s2771_s5 = sld [smem:[#allocation9_spill]] }
  0x17   :  { %1944 = vmatpush3.msra.mxu1 %v2353_v4  ;;  %1933 = vmatpush3.msra.mxu0 %v90_v1  ;;  %v2376_v9 = vld [vmem:[%s2765_s1] sm:$0xff]  ;;  %s2769_s1 = sld [smem:[#allocation7_spill]] }
  0x18   :  { %1945 = vmatprep.subr.mxu1 %v2190_v2  ;;  %1934 = vmatprep.subr.mxu0 %v89_v5  ;;  %v1807_v11 = vld [vmem:[%s2767_s2] ss:$0 sm:$0xff] }
  0x19   :  { %1938 = vmatprep.mubr.msk.f32.mxu0 %vm99_vm1, %v86_v6  ;;  %1935 = vmatpush3.msra.mxu0 %v89_v5 }
  0x1a   :  { %1946 = vmatpush3.msra.mxu1 %v2366_v7  ;;  %1936 = vmatprep.subr.mxu0 %v88_v8 }
  0x1b   :  { %1947 = vmatprep.subr.mxu1 %v2190_v2  ;;  %1937 = vmatpush3.msra.mxu0 %v88_v8 }
  0x1c   :  { %1948 = vmatpush3.msra.mxu1 %v2376_v9  ;;  %1939 = vmatmul.mubr.msk.f32.vlgmr.msra.gmra.mxu0 %vm99_vm1, %v87_v10 }
  0x1d   :  { %1950 = vmatmul.mubr.f32.vlgmr.msra.gmra.mxu1 %v2190_v2  ;;  %1952 = vmatprep.subr.mxu0 %v2190_v2 }
  0x1e   :  { %1960 = vmatprep.mubr.msk.f32.mxu0 %vm2191_vm0, %v2190_v2  ;;  %1953 = vmatpush3.msra.mxu0 %v2345_v3 }
  0x1f   :  { %1963 = vmatprep.subr.mxu1 %v2190_v2  ;;  %1954 = vmatprep.subr.mxu0 %v2190_v2 }
  0x20   :  { %1964 = vmatpush3.msra.mxu1 %v2345_v3  ;;  %1955 = vmatpush3.msra.mxu0 %v2353_v4 }
  0x21   :  { %1965 = vmatprep.subr.mxu1 %v2190_v2  ;;  %1956 = vmatprep.subr.mxu0 %v2190_v2 }
  0x22   :  { %1966 = vmatpush3.msra.mxu1 %v2353_v4  ;;  %1957 = vmatpush3.msra.mxu0 %v2366_v7 }
  0x23   :  { %1967 = vmatprep.subr.mxu1 %v2190_v2  ;;  %1958 = vmatprep.subr.mxu0 %v2190_v2 }
  0x24   :  { %1968 = vmatpush3.msra.mxu1 %v2366_v7  ;;  %1959 = vmatpush3.msra.mxu0 %v2376_v9 }
  0x25   :  { %1969 = vmatprep.subr.mxu1 %v2190_v2  ;;  %1971 = vmatprep.mubr.msk.f32.mxu1 %vm2191_vm0, %v2190_v2 }
  0x26   :  { %1970 = vmatpush3.msra.mxu1 %v2376_v9  ;;  %1974 = vmatprep.subr.mxu0 %v2190_v2 }
  0x27   :  { %1985 = vmatprep.subr.mxu1 %v2190_v2 }
  0xdc   :  { %v1940_v12 = vpop.f32.mrf.mxu0 }
  0xdd   :  { %v254_v13 = vpop.f32.mrf.mxu1  ;;  %v2411_v14 = vadd.f32 %v1940_v12, %v1807_v11 }
  0xde   :  { %v172_v15 = vpop.f32.mrf.mxu0 }
  0xdf   :  { %v1951_v16 = vpop.f32.mrf.mxu1  ;;  %v2413_v17 = vadd.f32 %v1807_v11, %v172_v15 }
  0xe1   :  { %v258_v18 = vadd.f32 %v254_v13, %v2413_v17 }
  0xe3   :  { %2118 = vtanh.f32 %v258_v18  ;;  %v1810_v20 = vmul.f32 -1.442695, %v258_v18 }
  0xe5   :  { %2120 = vpow2.f32 %v1810_v20 }
  0xf0   :  { %v2119_v19 = vpop.eup %2118 }
  0xf1   :  { %268 = vrot.lane.b32.xlu0 %v2119_v19, %s2192_s9 }
  0xf2   :  { %v2121_v21 = vpop.eup %2120 }
  0xf3   :  { %v262_v22 = vadd.f32 1.0, %v2121_v21 }
  0xf5   :  { %2122 = vrcp.f32 %v262_v22 }
 0x102   :  { %v2123_v23 = vpop.eup %2122 }
 0x103   :  { %v266_v26 = vmul.f32 0.0, %v2123_v23 }
 0x163   :  { %v269_v24 = vpop.permute.xlu0 %268 }
 0x164   :  { %v271_v25 = vmul.f32 %v2123_v23, %v269_v24 }
 0x166   :  { %273 = vrot.lane.b32.xlu0 %v271_v25, %s2192_s9 }
 0x1d8   :  { %v274_v27 = vpop.permute.xlu0 %273 }
 0x1d9   :  { %v276_v28 = vadd.f32 %v274_v27, %v266_v26 }
 0x1db   :  { %2124 = vtanh.f32 %v276_v28  ;;  %v370_v44 = vrot.slane %v276_v28, 6 }
 0x1e8   :  { %v2125_v29 = vpop.eup %2124 }
 0x1e9   :  { %279 = vrot.lane.b32.xlu1 %v2125_v29, %s2192_s9 }
 0x25b   :  { %v280_v30 = vpop.permute.xlu1 %279 }
 0x25c   :  { %v282_v31 = vmul.f32 %v2123_v23, %v280_v30 }
 0x25e   :  { %284 = vrot.lane.b32.xlu1 %v282_v31, %s2193_s13 }
 0x2d0   :  { %v285_v32 = vpop.permute.xlu1 %284 }
 0x2d1   :  { %1961 = vmatmul.mubr.msk.f32.vlgmr.msra.gmra.mxu0 %vm99_vm1, %v285_v32 }
 0x2d2   :  { %1975 = vmatpush3.msra.mxu0 %v2345_v3  ;;  %1982 = vmatprep.mubr.msk.f32.mxu0 %vm2191_vm0, %v2190_v2 }
 0x2d3   :  { %1976 = vmatprep.subr.mxu0 %v2190_v2 }
 0x2d4   :  { %1977 = vmatpush3.msra.mxu0 %v2353_v4 }
 0x2d5   :  { %1978 = vmatprep.subr.mxu0 %v2190_v2 }
 0x2d6   :  { %1979 = vmatpush3.msra.mxu0 %v2366_v7 }
 0x2d7   :  { %1980 = vmatprep.subr.mxu0 %v2190_v2 }
 0x2d8   :  { %1981 = vmatpush3.msra.mxu0 %v2376_v9 }
 0x2d9   :  { %1996 = vmatprep.subr.mxu0 %v2190_v2 }
 0x391   :  { %v354_v33 = vpop.f32.mrf.mxu0 }
 0x392   :  { %v359_v34 = vrot.slane %v354_v33, 6 }
 0x393   :  { %v1962_v35 = vpop.f32.mrf.mxu0 }
 0x394   :  { %v361_v36 = vadd.f32 %v359_v34, %v2413_v17 }
 0x396   :  { %2126 = vtanh.f32 %v361_v36  ;;  %v1812_v38 = vmul.f32 -1.442695, %v361_v36 }
 0x398   :  { %2128 = vpow2.f32 %v1812_v38 }
 0x3a3   :  { %v2127_v37 = vpop.eup %2126 }
 0x3a4   :  { %374 = vrot.lane.b32.xlu0 %v2127_v37, %s2192_s9 }
 0x3a5   :  { %v2129_v39 = vpop.eup %2128 }
 0x3a6   :  { %v365_v40 = vadd.f32 1.0, %v2129_v39 }
 0x3a8   :  { %2130 = vrcp.f32 %v365_v40 }
 0x3b5   :  { %v2131_v41 = vpop.eup %2130 }
 0x3b6   :  { %v372_v45 = vmul.f32 %v2131_v41, %v370_v44 }
 0x416   :  { %v375_v42 = vpop.permute.xlu0 %374 }
 0x417   :  { %v377_v43 = vmul.f32 %v2131_v41, %v375_v42 }
 0x419   :  { %379 = vrot.lane.b32.xlu1 %v377_v43, %s2192_s9 }
 0x48b   :  { %v380_v46 = vpop.permute.xlu1 %379 }
 0x48c   :  { %v382_v47 = vadd.f32 %v380_v46, %v372_v45 }
 0x48e   :  { %2132 = vtanh.f32 %v382_v47  ;;  %v477_v0 = vrot.slane %v382_v47, 6 }
 0x49b   :  { %v2133_v48 = vpop.eup %2132 }
 0x49c   :  { %385 = vrot.lane.b32.xlu0 %v2133_v48, %s2192_s9 }
 0x50e   :  { %v386_v49 = vpop.permute.xlu0 %385 }
 0x50f   :  { %v388_v50 = vmul.f32 %v2131_v41, %v386_v49 }
 0x511   :  { %v390_v51 = vrot.slane %v388_v50, 2 }
 0x513   :  { %391 = vrot.lane.b32.xlu1 %v390_v51, %s2193_s13 }
 0x585   :  { %v392_v52 = vpop.permute.xlu1 %391 }
 0x586   :  { %1972 = vmatmul.mubr.msk.f32.vlgmr.msra.gmra.mxu1 %vm99_vm1, %v392_v52 }
 0x587   :  { %1986 = vmatpush3.msra.mxu1 %v2345_v3  ;;  %1993 = vmatprep.mubr.msk.f32.mxu1 %vm2191_vm0, %v2190_v2 }
 0x588   :  { %1987 = vmatprep.subr.mxu1 %v2190_v2 }
 0x589   :  { %1988 = vmatpush3.msra.mxu1 %v2353_v4 }
 0x58a   :  { %1989 = vmatprep.subr.mxu1 %v2190_v2 }
 0x58b   :  { %1990 = vmatpush3.msra.mxu1 %v2366_v7 }
 0x58c   :  { %1991 = vmatprep.subr.mxu1 %v2190_v2 }
 0x58d   :  { %1992 = vmatpush3.msra.mxu1 %v2376_v9 }
 0x58e   :  { %2007 = vmatprep.subr.mxu1 %v2190_v2 }
 0x646   :  { %v461_v53 = vpop.f32.mrf.mxu1 }
 0x647   :  { %v466_v54 = vrot.slane %v461_v53, 4 }
 0x648   :  { %v1973_v55 = vpop.f32.mrf.mxu1 }
 0x649   :  { %v468_v56 = vadd.f32 %v466_v54, %v2413_v17 }
 0x64b   :  { %2134 = vtanh.f32 %v468_v56  ;;  %v1814_v58 = vmul.f32 -1.442695, %v468_v56 }
 0x64d   :  { %2136 = vpow2.f32 %v1814_v58 }
 0x658   :  { %v2135_v57 = vpop.eup %2134 }
 0x659   :  { %481 = vrot.lane.b32.xlu0 %v2135_v57, %s2192_s9 }
 0x65a   :  { %v2137_v59 = vpop.eup %2136 }
 0x65b   :  { %v472_v60 = vadd.f32 1.0, %v2137_v59 }
 0x65d   :  { %2138 = vrcp.f32 %v472_v60 }
 0x66a   :  { %v2139_v61 = vpop.eup %2138 }
 0x66b   :  { %v479_v1 = vmul.f32 %v2139_v61, %v477_v0 }
 0x6cb   :  { %v482_v62 = vpop.permute.xlu0 %481 }
 0x6cc   :  { %v484_v63 = vmul.f32 %v2139_v61, %v482_v62 }
 0x6ce   :  { %486 = vrot.lane.b32.xlu1 %v484_v63, %s2192_s9 }
 0x740   :  { %v487_v5 = vpop.permute.xlu1 %486 }
 0x741   :  { %v489_v6 = vadd.f32 %v487_v5, %v479_v1 }
 0x743   :  { %2140 = vtanh.f32 %v489_v6  ;;  %v584_v27 = vrot.slane %v489_v6, 6 }
 0x750   :  { %v2141_v8 = vpop.eup %2140 }
 0x751   :  { %492 = vrot.lane.b32.xlu0 %v2141_v8, %s2192_s9 }
 0x7c3   :  { %v493_v10 = vpop.permute.xlu0 %492 }
 0x7c4   :  { %v495_v11 = vmul.f32 %v2139_v61, %v493_v10 }
 0x7c6   :  { %v497_v12 = vrot.slane %v495_v11, 4 }
 0x7c8   :  { %498 = vrot.lane.b32.xlu1 %v497_v12, %s2193_s13 }
 0x83a   :  { %v499_v13 = vpop.permute.xlu1 %498 }
 0x83b   :  { %1983 = vmatmul.mubr.msk.f32.vlgmr.msra.gmra.mxu0 %vm99_vm1, %v499_v13 }
 0x83c   :  { %1997 = vmatpush3.msra.mxu0 %v2345_v3  ;;  %2004 = vmatprep.mubr.msk.f32.mxu0 %vm2191_vm0, %v2190_v2 }
 0x83d   :  { %1998 = vmatprep.subr.mxu0 %v2190_v2 }
 0x83e   :  { %1999 = vmatpush3.msra.mxu0 %v2353_v4 }
 0x83f   :  { %2000 = vmatprep.subr.mxu0 %v2190_v2 }
 0x840   :  { %2001 = vmatpush3.msra.mxu0 %v2366_v7 }
 0x841   :  { %2002 = vmatprep.subr.mxu0 %v2190_v2 }
 0x842   :  { %2003 = vmatpush3.msra.mxu0 %v2376_v9 }
 0x843   :  { %2018 = vmatprep.subr.mxu0 %v2190_v2 }
 0x8fb   :  { %v568_v15 = vpop.f32.mrf.mxu0 }
 0x8fc   :  { %v573_v16 = vrot.slane %v568_v15, 2 }
 0x8fd   :  { %v1984_v18 = vpop.f32.mrf.mxu0 }
 0x8fe   :  { %v575_v19 = vadd.f32 %v573_v16, %v2413_v17 }
 0x900   :  { %2142 = vtanh.f32 %v575_v19  ;;  %v1816_v21 = vmul.f32 -1.442695, %v575_v19 }
 0x902   :  { %2144 = vpow2.f32 %v1816_v21 }
 0x90d   :  { %v2143_v20 = vpop.eup %2142 }
 0x90e   :  { %588 = vrot.lane.b32.xlu0 %v2143_v20, %s2192_s9 }
 0x90f   :  { %v2145_v22 = vpop.eup %2144 }
 0x910   :  { %v579_v23 = vadd.f32 1.0, %v2145_v22 }
 0x912   :  { %2146 = vrcp.f32 %v579_v23 }
 0x91f   :  { %v2147_v24 = vpop.eup %2146 }
 0x920   :  { %v586_v28 = vmul.f32 %v2147_v24, %v584_v27 }
 0x980   :  { %v589_v25 = vpop.permute.xlu0 %588 }
 0x981   :  { %v591_v26 = vmul.f32 %v2147_v24, %v589_v25 }
 0x983   :  { %593 = vrot.lane.b32.xlu1 %v591_v26, %s2192_s9 }
 0x9f5   :  { %v594_v29 = vpop.permute.xlu1 %593 }
 0x9f6   :  { %v596_v30 = vadd.f32 %v594_v29, %v586_v28 }
 0x9f8   :  { %2148 = vtanh.f32 %v596_v30  ;;  %v688_v45 = vrot.slane %v596_v30, 6 }
 0xa05   :  { %v2149_v17 = vpop.eup %2148 }
 0xa06   :  { %599 = vrot.lane.b32.xlu0 %v2149_v17, %s2192_s9 }
 0xa78   :  { %v600_v31 = vpop.permute.xlu0 %599 }
 0xa79   :  { %v602_v32 = vmul.f32 %v2147_v24, %v600_v31 }
 0xa7b   :  { %v604_v33 = vrot.slane %v602_v32, 6 }
 0xa7d   :  { %605 = vrot.lane.b32.xlu1 %v604_v33, %s2193_s13 }
 0xaef   :  { %v606_v34 = vpop.permute.xlu1 %605 }
 0xaf0   :  { %1994 = vmatmul.mubr.msk.f32.vlgmr.msra.gmra.mxu1 %vm99_vm1, %v606_v34 }
 0xaf1   :  { %2008 = vmatpush3.msra.mxu1 %v2345_v3  ;;  %2015 = vmatprep.mubr.msk.f32.mxu1 %vm2191_vm0, %v2190_v2 }
 0xaf2   :  { %2009 = vmatprep.subr.mxu1 %v2190_v2 }
 0xaf3   :  { %2010 = vmatpush3.msra.mxu1 %v2353_v4 }
 0xaf4   :  { %2011 = vmatprep.subr.mxu1 %v2190_v2 }
 0xaf5   :  { %2012 = vmatpush3.msra.mxu1 %v2366_v7 }
 0xaf6   :  { %2013 = vmatprep.subr.mxu1 %v2190_v2 }
 0xaf7   :  { %2014 = vmatpush3.msra.mxu1 %v2376_v9 }
 0xaf8   :  { %2029 = vmatprep.subr.mxu1 %v2190_v2 }
 0xbb0   :  { %v675_v35 = vpop.f32.mrf.mxu1 }
 0xbb1   :  { %v679_v36 = vadd.f32 %v675_v35, %v2411_v14 }
 0xbb2   :  { %v1995_v37 = vpop.f32.mrf.mxu1 }
 0xbb3   :  { %2150 = vtanh.f32 %v679_v36  ;;  %v1818_v39 = vmul.f32 -1.442695, %v679_v36 }
 0xbb5   :  { %2152 = vpow2.f32 %v1818_v39 }
 0xbc0   :  { %v2151_v38 = vpop.eup %2150 }
 0xbc1   :  { %692 = vrot.lane.b32.xlu0 %v2151_v38, %s2192_s9 }
 0xbc2   :  { %v2153_v40 = vpop.eup %2152 }
 0xbc3   :  { %v683_v41 = vadd.f32 1.0, %v2153_v40 }
 0xbc5   :  { %2154 = vrcp.f32 %v683_v41 }
 0xbd2   :  { %v2155_v42 = vpop.eup %2154 }
 0xbd3   :  { %v690_v46 = vmul.f32 %v2155_v42, %v688_v45 }
 0xc33   :  { %v693_v43 = vpop.permute.xlu0 %692 }
 0xc34   :  { %v695_v44 = vmul.f32 %v2155_v42, %v693_v43 }
 0xc36   :  { %697 = vrot.lane.b32.xlu1 %v695_v44, %s2192_s9 }
 0xca8   :  { %v698_v47 = vpop.permute.xlu1 %697 }
 0xca9   :  { %v700_v48 = vadd.f32 %v698_v47, %v690_v46  ;;  %v1029_v46 = vld [vmem:[%s2768_s8 + $0x10] sm:$0xff]  ;;  %v1028_v47 = vld [vmem:[%s2768_s8 + $0x8] sm:$0xff] }
 0xcab   :  { %2156 = vtanh.f32 %v700_v48 }
 0xcb8   :  { %v2157_v49 = vpop.eup %2156 }
 0xcb9   :  { %703 = vrot.lane.b32.xlu0 %v2157_v49, %s2192_s9 }
 0xd2b   :  { %v704_v50 = vpop.permute.xlu0 %703 }
 0xd2c   :  { %v706_v51 = vmul.f32 %v2155_v42, %v704_v50  ;;  %v1118_v50 = vld [vmem:[%s2769_s1 + $0x18] sm:$0xff] }
 0xd2e   :  { %708 = vrot.lane.b32.xlu1 %v706_v51, %s2193_s13 }
 0xda0   :  { %v709_v52 = vpop.permute.xlu1 %708 }
 0xda1   :  { %2005 = vmatmul.mubr.msk.f32.vlgmr.msra.gmra.mxu0 %vm99_vm1, %v709_v52 }
 0xda2   :  { %2019 = vmatpush3.msra.mxu0 %v2345_v3  ;;  %2026 = vmatprep.mubr.msk.f32.mxu0 %vm2191_vm0, %v2190_v2 }
 0xda3   :  { %2020 = vmatprep.subr.mxu0 %v2190_v2 }
 0xda4   :  { %2021 = vmatpush3.msra.mxu0 %v2353_v4 }
 0xda5   :  { %2022 = vmatprep.subr.mxu0 %v2190_v2 }
 0xda6   :  { %2023 = vmatpush3.msra.mxu0 %v2366_v7 }
 0xda7   :  { %2024 = vmatprep.subr.mxu0 %v2190_v2 }
 0xda8   :  { %2025 = vmatpush3.msra.mxu0 %v2376_v9  ;;  %v794_v9 = vrot.slane %v700_v48, 6  ;;  %v1027_v48 = vld [vmem:[%s2768_s8] sm:$0xff] }
 0xda9   :  { %2040 = vmatprep.subr.mxu0 %v2190_v2 }
 0xe61   :  { %v778_v53 = vpop.f32.mrf.mxu0 }
 0xe62   :  { %v783_v54 = vrot.slane %v778_v53, 6 }
 0xe63   :  { %v2006_v3 = vpop.f32.mrf.mxu0 }
 0xe64   :  { %v785_v55 = vadd.f32 %v783_v54, %v2411_v14  ;;  %v1117_v3 = vld [vmem:[%s2769_s1 + $0x10] sm:$0xff] }
 0xe66   :  { %2158 = vtanh.f32 %v785_v55  ;;  %v1820_v4 = vmul.f32 -1.442695, %v785_v55  ;;  %v1116_v55 = vld [vmem:[%s2769_s1 + $0x8] sm:$0xff] }
 0xe68   :  { %2160 = vpow2.f32 %v1820_v4  ;;  %v1204_v4 = vld [vmem:[%s2770_s7 + $0x8] sm:$0xff] }
 0xe73   :  { %v2159_v56 = vpop.eup %2158 }
 0xe74   :  { %798 = vrot.lane.b32.xlu0 %v2159_v56, %s2192_s9  ;;  %v1115_v56 = vld [vmem:[%s2769_s1] sm:$0xff] }
 0xe75   :  { %v2161_v57 = vpop.eup %2160 }
 0xe76   :  { %v789_v58 = vadd.f32 1.0, %v2161_v57  ;;  %v1203_v57 = vld [vmem:[%s2770_s7] sm:$0xff]  ;;  %s2774_s7 = sld [smem:[#allocation12_spill]] }
 0xe78   :  { %2162 = vrcp.f32 %v789_v58  ;;  %v1202_v58 = vld [vmem:[%s2771_s5] sm:$0x3] }
 0xe85   :  { %v2163_v7 = vpop.eup %2162 }
 0xe86   :  { %v796_v61 = vmul.f32 %v2163_v7, %v794_v9 }
 0xee6   :  { %v799_v59 = vpop.permute.xlu0 %798 }
 0xee7   :  { %v801_v60 = vmul.f32 %v2163_v7, %v799_v59 }
 0xee9   :  { %803 = vrot.lane.b32.xlu1 %v801_v60, %s2192_s9 }
 0xf5b   :  { %v804_v62 = vpop.permute.xlu1 %803 }
 0xf5c   :  { %v806_v63 = vadd.f32 %v804_v62, %v796_v61 }
 0xf5e   :  { %2164 = vtanh.f32 %v806_v63  ;;  %v901_v23 = vrot.slane %v806_v63, 6 }
 0xf6b   :  { %v2165_v0 = vpop.eup %2164 }
 0xf6c   :  { %809 = vrot.lane.b32.xlu0 %v2165_v0, %s2192_s9 }
 0xfde   :  { %v810_v1 = vpop.permute.xlu0 %809 }
 0xfdf   :  { %v812_v5 = vmul.f32 %v2163_v7, %v810_v1 }
 0xfe1   :  { %v814_v6 = vrot.slane %v812_v5, 2 }
 0xfe3   :  { %815 = vrot.lane.b32.xlu1 %v814_v6, %s2193_s13 }
0x1055   :  { %v816_v8 = vpop.permute.xlu1 %815 }
0x1056   :  { %2016 = vmatmul.mubr.msk.f32.vlgmr.msra.gmra.mxu1 %vm99_vm1, %v816_v8 }
0x1057   :  { %2037 = vmatprep.mubr.msk.f32.mxu1 %vm2191_vm0, %v2190_v2 }
0x1116   :  { %v885_v10 = vpop.f32.mrf.mxu1 }
0x1117   :  { %v890_v11 = vrot.slane %v885_v10, 4  ;;  %v1829_v10 = vld [vmem:[%s2774_s7] ss:$0 sm:$0xff] }
0x1118   :  { %v2017_v12 = vpop.f32.mrf.mxu1 }
0x1119   :  { %v892_v13 = vadd.f32 %v890_v11, %v2411_v14 }
0x111b   :  { %2166 = vtanh.f32 %v892_v13  ;;  %v1822_v16 = vmul.f32 -1.442695, %v892_v13 }
0x111d   :  { %2168 = vpow2.f32 %v1822_v16 }
0x1128   :  { %v2167_v15 = vpop.eup %2166 }
0x1129   :  { %905 = vrot.lane.b32.xlu0 %v2167_v15, %s2192_s9 }
0x112a   :  { %v2169_v18 = vpop.eup %2168 }
0x112b   :  { %v896_v19 = vadd.f32 1.0, %v2169_v18 }
0x112d   :  { %2170 = vrcp.f32 %v896_v19 }
0x113a   :  { %v2171_v20 = vpop.eup %2170 }
0x113b   :  { %v903_v24 = vmul.f32 %v2171_v20, %v901_v23 }
0x119b   :  { %v906_v21 = vpop.permute.xlu0 %905 }
0x119c   :  { %v908_v22 = vmul.f32 %v2171_v20, %v906_v21 }
0x119e   :  { %910 = vrot.lane.b32.xlu1 %v908_v22, %s2192_s9 }
0x1210   :  { %v911_v25 = vpop.permute.xlu1 %910 }
0x1211   :  { %v913_v26 = vadd.f32 %v911_v25, %v903_v24 }
0x1213   :  { %2172 = vtanh.f32 %v913_v26  ;;  %v1008_v42 = vrot.slane %v913_v26, 6  ;;  %v1327_v26 = vld [vmem:[%s2775_s10 + $0x18] sm:$0xff] }
0x1220   :  { %v2173_v27 = vpop.eup %2172 }
0x1221   :  { %916 = vrot.lane.b32.xlu0 %v2173_v27, %s2192_s9  ;;  %v1326_v27 = vld [vmem:[%s2775_s10 + $0x10] sm:$0xff] }
0x1293   :  { %v917_v28 = vpop.permute.xlu0 %916 }
0x1294   :  { %v919_v29 = vmul.f32 %v2171_v20, %v917_v28  ;;  %v1325_v28 = vld [vmem:[%s2775_s10 + $0x8] sm:$0xff] }
0x1296   :  { %v921_v30 = vrot.slane %v919_v29, 4  ;;  %v1324_v29 = vld [vmem:[%s2775_s10] sm:$0xff] }
0x1298   :  { %922 = vrot.lane.b32.xlu1 %v921_v30, %s2193_s13 }
0x130a   :  { %v923_v17 = vpop.permute.xlu1 %922 }
0x130b   :  { %2027 = vmatmul.mubr.msk.f32.vlgmr.msra.gmra.mxu0 %vm99_vm1, %v923_v17 }
0x130c   :  { %2048 = vmatprep.mubr.msk.f32.mxu0 %vm2191_vm0, %v2190_v2  ;;  %2041 = vmatpush3.msra.mxu0 %v1118_v50  ;;  %v1443_v50 = vld [vmem:[%s2732_s17 + $0x18] sm:$0xff] }
0x130d   :  { %2042 = vmatprep.subr.mxu0 %v2190_v2 }
0x130e   :  { %2043 = vmatpush3.msra.mxu0 %v1117_v3 }
0x130f   :  { %2044 = vmatprep.subr.mxu0 %v2190_v2 }
0x1310   :  { %2045 = vmatpush3.msra.mxu0 %v1116_v55 }
0x1311   :  { %2046 = vmatprep.subr.mxu0 %v2190_v2 }
0x1312   :  { %2047 = vmatpush3.msra.mxu0 %v1115_v56 }
0x1313   :  { %2069 = vmatprep.subr.mxu0 %v2190_v2 }
0x13cb   :  { %v992_v31 = vpop.f32.mrf.mxu0 }
0x13cc   :  { %v997_v32 = vrot.slane %v992_v31, 2 }
0x13cd   :  { %v2028_v33 = vpop.f32.mrf.mxu0 }
0x13ce   :  { %v999_v34 = vadd.f32 %v997_v32, %v2411_v14  ;;  %v1030_v14 = vld [vmem:[%s2768_s8 + $0x18] sm:$0xff]  ;;  %s2194_s8 = smov 96   ;;  %v1831_v33 = vld [vmem:[%s2729_s11] ss:$0 sm:$0xff] }
0x13cf   :  { %2030 = vmatpush3.msra.mxu1 %v1030_v14 }
0x13d0   :  { %2174 = vtanh.f32 %v999_v34  ;;  %v1824_v36 = vmul.f32 -1.442695, %v999_v34  ;;  %2031 = vmatprep.subr.mxu1 %v2190_v2 }
0x13d1   :  { %2032 = vmatpush3.msra.mxu1 %v1029_v46 }
0x13d2   :  { %2176 = vpow2.f32 %v1824_v36  ;;  %2033 = vmatprep.subr.mxu1 %v2190_v2 }
0x13d3   :  { %2034 = vmatpush3.msra.mxu1 %v1028_v47 }
0x13d4   :  { %2035 = vmatprep.subr.mxu1 %v2190_v2 }
0x13d5   :  { %2036 = vmatpush3.msra.mxu1 %v1027_v48 }
0x13d6   :  { %2051 = vmatprep.subr.mxu1 %v2190_v2 }
0x13dd   :  { %v2175_v35 = vpop.eup %2174 }
0x13de   :  { %1012 = vrot.lane.b32.xlu0 %v2175_v35, %s2192_s9  ;;  %v1832_v35 = vld [vmem:[%s2730_s12] ss:$0 sm:$0xff] }
0x13df   :  { %v2177_v37 = vpop.eup %2176 }
0x13e0   :  { %v1003_v38 = vadd.f32 1.0, %v2177_v37 }
0x13e2   :  { %2178 = vrcp.f32 %v1003_v38  ;;  %v1833_v38 = vld [vmem:[%s2731_s14] ss:$0 sm:$0xff] }
0x13ef   :  { %v2179_v39 = vpop.eup %2178 }
0x13f0   :  { %v1010_v43 = vmul.f32 %v2179_v39, %v1008_v42 }
0x1450   :  { %v1013_v40 = vpop.permute.xlu0 %1012 }
0x1451   :  { %v1015_v41 = vmul.f32 %v2179_v39, %v1013_v40 }
0x1453   :  { %1017 = vrot.lane.b32.xlu1 %v1015_v41, %s2192_s9 }
0x14c5   :  { %v1018_v44 = vpop.permute.xlu1 %1017 }
0x14c6   :  { %v1020_v45 = vadd.f32 %v1018_v44, %v1010_v43 }
0x14c8   :  { %2180 = vtanh.f32 %v1020_v45 }
0x14d5   :  { %v2181_v49 = vpop.eup %2180 }
0x14d6   :  { %1023 = vrot.lane.b32.xlu0 %v2181_v49, %s2192_s9  ;;  %s2772_s9 = sld [smem:[#allocation10_spill]] }
0x14dc   :  { %v1825_v7 = vld [vmem:[%s2772_s9] ss:$0 sm:$0xff] }
0x1548   :  { %v1024_v51 = vpop.permute.xlu0 %1023 }
0x1549   :  { %v1026_v52 = vmul.f32 %v2179_v39, %v1024_v51  ;;  %v1442_v51 = vld [vmem:[%s2732_s17 + $0x10] sm:$0xff] }
0x154b   :  { %v1039_v53 = vrot.slane %v1026_v52, 6  ;;  %v1441_v52 = vld [vmem:[%s2732_s17 + $0x8] sm:$0xff] }
0x154d   :  { %1040 = vrot.lane.b32.xlu1 %v1039_v53, %s2193_s13  ;;  %s2773_s13 = sld [smem:[#allocation11_spill]]  ;;  %v1440_v53 = vld [vmem:[%s2732_s17] sm:$0xff] }
0x1553   :  { %v1827_v0 = vld [vmem:[%s2773_s13] ss:$0 sm:$0xff] }
0x15bf   :  { %v1041_v54 = vpop.permute.xlu1 %1040 }
0x15c0   :  { %2038 = vmatmul.mubr.msk.f32.vlgmr.msra.gmra.mxu1 %vm99_vm1, %v1041_v54 }
0x15c1   :  { %2055 = vmatprep.mubr.msk.f32.mxu1 %vm2191_vm0, %v2190_v2  ;;  %2052 = vmatpush3.msra.mxu1 %v1204_v4  ;;  %v1835_v4 = vld [vmem:[%s2733_s15] ss:$0 sm:$0xff] }
0x15c2   :  { %2053 = vmatprep.subr.mxu1 %v2190_v2 }
0x15c3   :  { %2054 = vmatpush3.msra.mxu1 %v1203_v57 }
0x15c4   :  { %2056 = vmatmul.mubr.msk.f32.vlgmr.msra.gmra.mxu1 %vm1212_vm2, %v1202_v58  ;;  %2058 = vmatprep.subr.mxu1 %v2190_v2  ;;  %v1836_v58 = vld [vmem:[%s2734_s16] ss:$0 sm:$0xff] }
0x15c5   :  { %2066 = vmatprep.mubr.msk.f32.mxu1 %vm2191_vm0, %v2190_v2  ;;  %2059 = vmatpush3.msra.mxu1 %v1327_v26 }
0x15c6   :  { %2060 = vmatprep.subr.mxu1 %v2190_v2 }
0x15c7   :  { %2061 = vmatpush3.msra.mxu1 %v1326_v27  ;;  %v1839_v27 = vld [vmem:[%s2738_s19] ss:$0 sm:$0xff] }
0x15c8   :  { %2062 = vmatprep.subr.mxu1 %v2190_v2 }
0x15c9   :  { %2063 = vmatpush3.msra.mxu1 %v1325_v28 }
0x15ca   :  { %2064 = vmatprep.subr.mxu1 %v2190_v2 }
0x15cb   :  { %2065 = vmatpush3.msra.mxu1 %v1324_v29  ;;  %v1840_v29 = vld [vmem:[%s2739_s20] ss:$0 sm:$0xff] }
0x15cc   :  { %2080 = vmatprep.subr.mxu1 %v2190_v2 }
0x1680   :  { %v1110_v59 = vpop.f32.mrf.mxu1 }
0x1681   :  { %v1111_v60 = vadd.f32 %v1825_v7, %v1110_v59 }
0x1682   :  { %v2039_v9 = vpop.f32.mrf.mxu1 }
0x1683   :  { %v1114_v61 = vmax.f32 %v1111_v60, 0.0  ;;  %v1837_v60 = vld [vmem:[%s2735_s18] ss:$0 sm:$0xff] }
0x1684   :  { %v1282_v62 = vpop.f32.mrf.mxu1 }
0x1685   :  { %2049 = vmatmul.mubr.msk.f32.vlgmr.msra.gmra.mxu0 %vm99_vm1, %v1114_v61  ;;  %v1283_v12 = vadd.f32 %v1829_v10, %v1282_v62 }
0x1686   :  { %2077 = vmatprep.mubr.msk.f32.mxu0 %vm2191_vm0, %v2190_v2  ;;  %v2057_v63 = vpop.f32.mrf.mxu1  ;;  %2070 = vmatpush3.msra.mxu0 %v1443_v50 }
0x1687   :  { %v1286_v15 = vmax.f32 %v1283_v12, 0.0  ;;  %2071 = vmatprep.subr.mxu0 %v2190_v2 }
0x1688   :  { %2072 = vmatpush3.msra.mxu0 %v1442_v51 }
0x1689   :  { %2073 = vmatprep.subr.mxu0 %v2190_v2 }
0x168a   :  { %2074 = vmatpush3.msra.mxu0 %v1441_v52 }
0x168b   :  { %2075 = vmatprep.subr.mxu0 %v2190_v2 }
0x168c   :  { %2076 = vmatpush3.msra.mxu0 %v1440_v53 }
0x168d   :  { %2091 = vmatprep.subr.mxu0 %v2190_v2 }
0x1745   :  { %v1195_v1 = vpop.f32.mrf.mxu0 }
0x1746   :  { %v1196_v5 = vadd.f32 %v1827_v0, %v1195_v1 }
0x1747   :  { %v2050_v6 = vpop.f32.mrf.mxu0 }
0x1748   :  { %1289 = vrot.lane.b32.xlu0 %v1196_v5, %s2194_s8  ;;  %2182 = vtanh.f32 %v1196_v5 }
0x1755   :  { %v2183_v8 = vpop.eup %2182 }
0x1756   :  { %v1200_v11 = vmul.f32 0.1, %v2183_v8 }
0x1758   :  { %v2576_v13 = vadd.f32 1.0, %v1200_v11 }
0x175a   :  { %v1287_v16 = vmul.f32 %v1286_v15, %v2576_v13  ;;  %v1559_v15 = vld [vmem:[%s2736_s21 + $0x18] sm:$0xff] }
0x17ba   :  { %v2579_v18 = vpop.permute.xlu0 %1289 }
0x17bb   :  { %v1292_v19 = vadd.f32 %v2579_v18, %v1287_v16  ;;  %v1558_v16 = vld [vmem:[%s2736_s21 + $0x10] sm:$0xff] }
0x17bd   :  { %v1294_v20 = vsel %vm1293_vm3, %v1292_v19, 0.0 }
0x17be   :  { %1295 = vadd.xlane.f32.xlu1 %v1294_v20  ;;  %v1646_v20 = vld [vmem:[%s2737_s24 + $0x8] sm:$0xff] }
0x1847   :  { %v1296_v21 = vpop.xlane.xlu1 %1295 }
0x1848   :  { %v1298_v22 = vmul.f32 0.03125, %v1296_v21  ;;  %v1556_v21 = vld [vmem:[%s2736_s21] sm:$0xff] }
0x184a   :  { %v1299_v23 = vsub.f32 %v1292_v19, %v1298_v22  ;;  %v1557_v19 = vld [vmem:[%s2736_s21 + $0x8] sm:$0xff]  ;;  %v1645_v22 = vld [vmem:[%s2737_s24] sm:$0xff] }
0x184c   :  { %v1300_v24 = vmul.f32 %v1299_v23, %v1299_v23 }
0x184e   :  { %v1301_v25 = vsel %vm1293_vm3, %v1300_v24, 0.0 }
0x184f   :  { %1302 = vadd.xlane.f32.xlu0 %v1301_v25 }
0x18d8   :  { %v1303_v30 = vpop.xlane.xlu0 %1302 }
0x18d9   :  { %v1304_v17 = vmul.f32 0.03125, %v1303_v30 }
0x18db   :  { %v1305_v31 = vadd.f32 1e-05, %v1304_v17 }
0x18dd   :  { %2184 = vrsqrt.f32 %v1305_v31  ;;  %v1644_v31 = vld [vmem:[%s2740_s23 + $0x18] sm:$0xff] }
0x18ea   :  { %v2185_v32 = vpop.eup %2184 }
0x18eb   :  { %v1307_v34 = vmul.f32 %v2185_v32, %v1299_v23  ;;  %v1643_v32 = vld [vmem:[%s2740_s23 + $0x10] sm:$0xff] }
0x18ed   :  { %v1315_v36 = vmul.f32 %v1831_v33, %v1307_v34  ;;  %v1642_v33 = vld [vmem:[%s2740_s23 + $0x8] sm:$0xff]  ;;  %v1641_v34 = vld [vmem:[%s2740_s23] sm:$0xff] }
0x18ef   :  { %v1323_v37 = vadd.f32 %v1832_v35, %v1315_v36  ;;  %v1841_v35 = vld [vmem:[%s2741_s22] ss:$0 sm:$0xff] }
0x18f1   :  { %2067 = vmatmul.mubr.msk.f32.vlgmr.msra.gmra.mxu1 %vm99_vm1, %v1323_v37 }
0x18f2   :  { %2088 = vmatprep.mubr.msk.f32.mxu1 %vm2191_vm0, %v2190_v2  ;;  %2081 = vmatpush3.msra.mxu1 %v1559_v15 }
0x18f3   :  { %2082 = vmatprep.subr.mxu1 %v2190_v2 }
0x18f4   :  { %2083 = vmatpush3.msra.mxu1 %v1558_v16 }
0x18f5   :  { %2084 = vmatprep.subr.mxu1 %v2190_v2 }
0x18f6   :  { %2085 = vmatpush3.msra.mxu1 %v1557_v19 }
0x18f7   :  { %2086 = vmatprep.subr.mxu1 %v2190_v2 }
0x18f8   :  { %2087 = vmatpush3.msra.mxu1 %v1556_v21 }
0x18f9   :  { %2102 = vmatprep.subr.mxu1 %v2190_v2 }
0x19b1   :  { %v1404_v39 = vpop.f32.mrf.mxu1 }
0x19b2   :  { %v1405_v40 = vadd.f32 %v1833_v38, %v1404_v39 }
0x19b3   :  { %v2068_v41 = vpop.f32.mrf.mxu1 }
0x19b4   :  { %v1408_v42 = vmax.f32 %v1405_v40, 0.0 }
0x19b6   :  { %v1409_v43 = vmul.f32 %v1408_v42, %v2576_v13 }
0x19b8   :  { %v1410_v44 = vadd.f32 %v1409_v43, %v2579_v18 }
0x19ba   :  { %v1411_v45 = vsel %vm1293_vm3, %v1410_v44, 0.0 }
0x19bb   :  { %1412 = vadd.xlane.f32.xlu0 %v1411_v45 }
0x1a44   :  { %v1413_v14 = vpop.xlane.xlu0 %1412 }
0x1a45   :  { %v1414_v46 = vmul.f32 0.03125, %v1413_v14 }
0x1a47   :  { %v1415_v47 = vsub.f32 %v1410_v44, %v1414_v46  ;;  %v1800_v44 = vld [vmem:[%s2743_s26] sm:$0x3] }
0x1a49   :  { %v1416_v48 = vmul.f32 %v1415_v47, %v1415_v47 }
0x1a4b   :  { %v1417_v49 = vsel %vm1293_vm3, %v1416_v48, 0.0 }
0x1a4c   :  { %1418 = vadd.xlane.f32.xlu1 %v1417_v49 }
0x1ad5   :  { %v1419_v54 = vpop.xlane.xlu1 %1418 }
0x1ad6   :  { %v1420_v3 = vmul.f32 0.03125, %v1419_v54 }
0x1ad8   :  { %v1421_v55 = vadd.f32 1e-05, %v1420_v3 }
0x1ada   :  { %2186 = vrsqrt.f32 %v1421_v55 }
0x1ae7   :  { %v2187_v56 = vpop.eup %2186 }
0x1ae8   :  { %v1423_v57 = vmul.f32 %v2187_v56, %v1415_v47 }
0x1aea   :  { %v1431_v7 = vmul.f32 %v1835_v4, %v1423_v57 }
0x1aec   :  { %v1439_v59 = vadd.f32 %v1836_v58, %v1431_v7 }
0x1aee   :  { %2078 = vmatmul.mubr.msk.f32.vlgmr.msra.gmra.mxu0 %vm99_vm1, %v1439_v59 }
0x1aef   :  { %2099 = vmatprep.mubr.msk.f32.mxu0 %vm2191_vm0, %v2190_v2 }
0x1bae   :  { %v1520_v9 = vpop.f32.mrf.mxu0 }
0x1baf   :  { %v1521_v61 = vadd.f32 %v1837_v60, %v1520_v9 }
0x1bb0   :  { %v2079_v62 = vpop.f32.mrf.mxu0 }
0x1bb1   :  { %v1524_v63 = vmax.f32 %v1521_v61, 0.0 }
0x1bb3   :  { %v1525_v0 = vmul.f32 %v1524_v63, %v2576_v13  ;;  %v1648_v13 = vld [vmem:[%s2737_s24 + $0x18] sm:$0xff] }
0x1bb4   :  { %2092 = vmatpush3.msra.mxu0 %v1648_v13 }
0x1bb5   :  { %v1526_v1 = vadd.f32 %v1525_v0, %v2579_v18  ;;  %2093 = vmatprep.subr.mxu0 %v2190_v2  ;;  %v1647_v18 = vld [vmem:[%s2737_s24 + $0x10] sm:$0xff] }
0x1bb6   :  { %2094 = vmatpush3.msra.mxu0 %v1647_v18 }
0x1bb7   :  { %v1527_v5 = vsel %vm1293_vm3, %v1526_v1, 0.0  ;;  %2095 = vmatprep.subr.mxu0 %v2190_v2 }
0x1bb8   :  { %1528 = vadd.xlane.f32.xlu0 %v1527_v5  ;;  %2096 = vmatpush3.msra.mxu0 %v1646_v20 }
0x1bb9   :  { %2097 = vmatprep.subr.mxu0 %v2190_v2 }
0x1bba   :  { %2098 = vmatpush3.msra.mxu0 %v1645_v22 }
0x1c41   :  { %v1529_v6 = vpop.xlane.xlu0 %1528 }
0x1c42   :  { %v1530_v8 = vmul.f32 0.03125, %v1529_v6 }
0x1c44   :  { %v1531_v10 = vsub.f32 %v1526_v1, %v1530_v8 }
0x1c46   :  { %v1532_v11 = vmul.f32 %v1531_v10, %v1531_v10 }
0x1c48   :  { %v1533_v12 = vsel %vm1293_vm3, %v1532_v11, 0.0 }
0x1c49   :  { %1534 = vadd.xlane.f32.xlu1 %v1533_v12 }
0x1cd2   :  { %v1535_v23 = vpop.xlane.xlu1 %1534 }
0x1cd3   :  { %v1536_v24 = vmul.f32 0.03125, %v1535_v23 }
0x1cd5   :  { %v1537_v25 = vadd.f32 1e-05, %v1536_v24 }
0x1cd7   :  { %2188 = vrsqrt.f32 %v1537_v25 }
0x1ce4   :  { %v2189_v26 = vpop.eup %2188 }
0x1ce5   :  { %v1539_v28 = vmul.f32 %v2189_v26, %v1531_v10 }
0x1ce7   :  { %v1547_v30 = vmul.f32 %v1839_v27, %v1539_v28 }
0x1ce9   :  { %v1555_v17 = vadd.f32 %v1840_v29, %v1547_v30 }
0x1ceb   :  { %2089 = vmatmul.mubr.msk.f32.vlgmr.msra.gmra.mxu1 %vm99_vm1, %v1555_v17  ;;  %2100 = vmatmul.mubr.msk.f32.vlgmr.msra.gmra.mxu0 %vm99_vm1, %v1555_v17 }
0x1cec   :  { %2103 = vmatpush3.msra.mxu1 %v1644_v31  ;;  %2110 = vmatprep.mubr.msk.f32.mxu1 %vm2191_vm0, %v2190_v2 }
0x1ced   :  { %2104 = vmatprep.subr.mxu1 %v2190_v2 }
0x1cee   :  { %2105 = vmatpush3.msra.mxu1 %v1643_v32 }
0x1cef   :  { %2106 = vmatprep.subr.mxu1 %v2190_v2 }
0x1cf0   :  { %2107 = vmatpush3.msra.mxu1 %v1642_v33 }
0x1cf1   :  { %2108 = vmatprep.subr.mxu1 %v2190_v2  ;;  %v1845_v2 = vld [vmem:[%s2742_s25] ss:$0 sm:$0xff] }
0x1cf2   :  { %2109 = vmatpush3.msra.mxu1 %v1641_v34 }
0x1dab   :  { %v1636_v36 = vpop.f32.mrf.mxu1  ;;  %v1715_v37 = vpop.f32.mrf.mxu0 }
0x1dac   :  { %v1637_v38 = vadd.f32 %v1841_v35, %v1636_v36 }
0x1dad   :  { %v2090_v39 = vpop.f32.mrf.mxu1  ;;  %v2101_v40 = vpop.f32.mrf.mxu0 }
0x1dae   :  { %v1640_v41 = vmax.f32 %v1637_v38, 0.0 }
0x1db0   :  { %2111 = vmatmul.mubr.msk.f32.vlgmr.msra.gmra.mxu1 %vm99_vm1, %v1640_v41 }
0x1e70   :  { %v1788_v42 = vpop.f32.mrf.mxu1 }
0x1e71   :  { %v1789_v43 = vadd.f32 %v1788_v42, %v1715_v37 }
0x1e72   :  { %v2112_v45 = vpop.f32.mrf.mxu1 }
0x1e73   :  { %v1799_v14 = vadd.f32 %v1845_v2, %v1789_v43 }
0x1e75   :  { %v1801_v46 = vadd.f32 %v1800_v44, %v1799_v14 }
0x1e77   :  { %1802 = vst [vmem:[%s2744_s27] sm:$0x3] %v1801_v46 }

</bundles_post_ra>
